<compile_context>
chip_gen: v7x
topology: tpu7x:2x2x1
jax: 0.10.0
libtpu: 0.0.40
codegen_flags: <defaults>
</compile_context>

<pallas_src>
import functools

import jax
import jax.numpy as jnp
import numpy as np
from jax.experimental import pallas as pl
from jax.experimental.pallas import tpu as pltpu


def _mlp_gaze_kernel(x_ref, w1_ref, b1_ref, w2_ref, b2_ref,
                     w3g_ref, b3g_ref, w3m_ref, b3m_ref,
                     og_ref, om_ref, acc_ref, *, inv_hw):
    k = pl.program_id(1)

    @pl.when(k == 0)
    def _():
        acc_ref[...] = jnp.zeros_like(acc_ref)

    # Hot loop: stream one (TN, C, THW) tile of x and accumulate row sums.
    x = x_ref[...].astype(jnp.float32)          # upcast after load (v5e VPU has no bf16)
    acc_ref[...] += jnp.sum(x, axis=-1)         # (TN, C)

    @pl.when(k == pl.num_programs(1) - 1)
    def _():
        pooled = acc_ref[...] * inv_hw          # mean over H*W, applied once per N-tile
        h1 = jnp.dot(pooled, w1_ref[...],
                     preferred_element_type=jnp.float32) + b1_ref[...]
        h1 = jnp.maximum(h1, 0.0)               # ReLU
        h2 = jnp.dot(h1, w2_ref[...],
                     preferred_element_type=jnp.float32) + b2_ref[...]
        # Dropout(p) is identity in eval mode.
        # TODO(synk): training-mode dropout (random mask + 1/(1-p) scaling) not implemented.
        og_ref[...] = (jnp.dot(h2, w3g_ref[...],
                               preferred_element_type=jnp.float32)
                       + b3g_ref[...]).astype(og_ref.dtype)
        om_ref[...] = (jnp.dot(h2, w3m_ref[...],
                               preferred_element_type=jnp.float32)
                       + b3m_ref[...]).astype(om_ref.dtype)


def _pick_tile_hw(hw, cap=2048):
    # Lane tile: a multiple of 128 (>=512 preferred) that divides HW; else full axis.
    if hw % 128 == 0:
        t = min(hw, cap)
        t -= t % 128
        while hw % t:
            t -= 128
        return t
    # TODO(synk): for large HW not a multiple of 128, pad/mask the last tile instead.
    return hw


def _pick_tile_n(n, c, thw, itemsize, budget_bytes=2 << 20):
    # Keep one x block <= ~2 MiB so 2x double-buffering + resident FC weights
    # stay well under the scoped-VMEM default (16 MiB v5e / 32 MiB v6e,v7x).
    rows = max(1, budget_bytes // max(1, c * thw * itemsize))
    rows = min(rows, n, 1024)
    if rows >= n:
        return n
    return max(8, (rows // 8) * 8)     # output block sublane dim: multiple of 8


def mlp_gaze_forward(x_nchw, params, *, flag=True):
    """Forward of mlp_gazeEs (eval mode). params use PyTorch (out, in) layout."""
    N, C, H, W = x_nchw.shape
    HW = H * W
    x = x_nchw.reshape(N, C, HW)       # native dtype kept -> minimal DMA bytes

    w1 = params["fc1_w"].T.astype(jnp.float32)               # (C, 1000)
    b1 = params["fc1_b"].reshape(1, -1).astype(jnp.float32)
    w2 = params["fc2_w"].T.astype(jnp.float32)                # (1000, 256)
    b2 = params["fc2_b"].reshape(1, -1).astype(jnp.float32)
    w3g = params["fc3_g_w"].T.astype(jnp.float32)              # (256, 2)
    b3g = params["fc3_g_b"].reshape(1, -1).astype(jnp.float32)
    w3m = params["fc3_m_w"].T.astype(jnp.float32)              # (256, 9)
    b3m = params["fc3_m_b"].reshape(1, -1).astype(jnp.float32)

    d1, d2 = w1.shape[1], w2.shape[1]
    n_g, n_m = w3g.shape[1], w3m.shape[1]

    thw = _pick_tile_hw(HW)
    tn = _pick_tile_n(N, C, thw, x.dtype.itemsize)
    grid = (pl.cdiv(N, tn), HW // thw)

    def const(shape):
        return pl.BlockSpec(shape, lambda i, k: (0, 0))

    in_specs = [
        pl.BlockSpec((tn, C, thw), lambda i, k: (i, 0, k)),
        const(w1.shape), const(b1.shape), const(w2.shape), const(b2.shape),
        const(w3g.shape), const(b3g.shape), const(w3m.shape), const(b3m.shape),
    ]
    out_specs = (
        pl.BlockSpec((tn, n_g), lambda i, k: (i, 0)),
        pl.BlockSpec((tn, n_m), lambda i, k: (i, 0)),
    )

    weight_arrays = (w1, b1, w2, b2, w3g, b3g, w3m, b3m)
    bytes_accessed = int(x.size * x.dtype.itemsize
                         + sum(a.size * a.dtype.itemsize for a in weight_arrays)
                         + N * (n_g + n_m) * 4)
    flops = int(N * C * HW + 2 * N * (C * d1 + d1 * d2 + d2 * (n_g + n_m)))
    cost = pl.CostEstimate(flops=flops, transcendentals=0,
                           bytes_accessed=bytes_accessed)

    out_g, out_m = pl.pallas_call(
        functools.partial(_mlp_gaze_kernel, inv_hw=1.0 / float(HW)),
        out_shape=(jax.ShapeDtypeStruct((N, n_g), jnp.float32),
                   jax.ShapeDtypeStruct((N, n_m), jnp.float32)),
        grid_spec=pltpu.PrefetchScalarGridSpec(
            num_scalar_prefetch=0,
            grid=grid,
            in_specs=in_specs,
            out_specs=out_specs,
            scratch_shapes=[pltpu.VMEM((tn, C), jnp.float32)],
        ),
        compiler_params=pltpu.CompilerParams(
            dimension_semantics=("parallel", "arbitrary")),
        cost_estimate=cost,
    )(x, w1, b1, w2, b2, w3g, b3g, w3m, b3m)

    if flag:
        return out_g, out_m
    return out_g


if __name__ == "__main__":
    key = jax.random.PRNGKey(0)
    kx, k1w, k1b, k2w, k2b, k3gw, k3gb, k3mw, k3mb = jax.random.split(key, 9)

    N, C, H, W = 2, 4, 16, 16
    D1, D2, NG, NM = 1000, 256, 2, 9    # hard-coded in the PyTorch module

    x = jax.random.normal(kx, (N, C, H, W), dtype=jnp.float32)

    def linear_init(kw, kb, out_f, in_f):
        bound = 1.0 / (in_f ** 0.5)     # nn.Linear default init: U(-1/sqrt(in), 1/sqrt(in))
        w = jax.random.uniform(kw, (out_f, in_f), minval=-bound, maxval=bound,
                               dtype=jnp.float32)
        b = jax.random.uniform(kb, (out_f,), minval=-bound, maxval=bound,
                               dtype=jnp.float32)
        return w, b

    fc1_w, fc1_b = linear_init(k1w, k1b, D1, C)
    fc2_w, fc2_b = linear_init(k2w, k2b, D2, D1)
    fc3_g_w, fc3_g_b = linear_init(k3gw, k3gb, NG, D2)
    fc3_m_w, fc3_m_b = linear_init(k3mw, k3mb, NM, D2)

    params = dict(fc1_w=fc1_w, fc1_b=fc1_b, fc2_w=fc2_w, fc2_b=fc2_b,
                  fc3_g_w=fc3_g_w, fc3_g_b=fc3_g_b,
                  fc3_m_w=fc3_m_w, fc3_m_b=fc3_m_b)

    out_g, out_m = mlp_gaze_forward(x, params, flag=True)
    out_g, out_m = jax.block_until_ready((out_g, out_m))

    # Plain-JAX reference (same eval-mode semantics as the PyTorch forward).
    pooled = jnp.mean(x, axis=(2, 3))
    h1 = jnp.maximum(pooled @ fc1_w.T + fc1_b, 0.0)
    h2 = h1 @ fc2_w.T + fc2_b
    ref_g = h2 @ fc3_g_w.T + fc3_g_b
    ref_m = h2 @ fc3_m_w.T + fc3_m_b

    assert out_g.shape == (N, NG) and out_m.shape == (N, NM)
    # Tolerance covers TPU default matmul precision (bf16-pass) differences
    # between the XLA reference dots and the in-kernel MXU dots.
    np.testing.assert_allclose(np.asarray(out_g), np.asarray(ref_g),
                               atol=2e-3, rtol=2e-2)
    np.testing.assert_allclose(np.asarray(out_m), np.asarray(ref_m),
                               atol=2e-3, rtol=2e-2)

    print("KERNEL_OK")
</pallas_src>

<mosaic_0001>
module attributes {stable_mosaic.version = 11 : i64} {
  func.func @_mlp_gaze_kernel(%arg0: i32, %arg1: i32, %arg2: memref<2x4x256xf32, #tpu.memory_space<vmem>>, %arg3: memref<4x1000xf32, #tpu.memory_space<vmem>>, %arg4: memref<1x1000xf32, #tpu.memory_space<vmem>>, %arg5: memref<1000x256xf32, #tpu.memory_space<vmem>>, %arg6: memref<1x256xf32, #tpu.memory_space<vmem>>, %arg7: memref<256x2xf32, #tpu.memory_space<vmem>>, %arg8: memref<1x2xf32, #tpu.memory_space<vmem>>, %arg9: memref<256x9xf32, #tpu.memory_space<vmem>>, %arg10: memref<1x9xf32, #tpu.memory_space<vmem>>, %arg11: memref<2x2xf32, #tpu.memory_space<vmem>>, %arg12: memref<2x9xf32, #tpu.memory_space<vmem>>, %arg13: memref<2x4xf32, #tpu.memory_space<vmem>>) attributes {dimension_semantics = [#tpu.dimension_semantics<parallel>, #tpu.dimension_semantics<arbitrary>], iteration_bounds = array<i64: 1, 1>, scalar_prefetch = 0 : i64, scratch_operands = 1 : i64, tpu.core_type = #tpu.core_type<tc>, window_params = [{transform_indices = @transform_0, window_bounds = array<i64: 2, 4, 256>}, {pipeline_mode = #tpu.pipeline_mode<synchronous>, transform_indices = @transform_1, window_bounds = array<i64: 4, 1000>}, {pipeline_mode = #tpu.pipeline_mode<synchronous>, transform_indices = @transform_2, window_bounds = array<i64: 1, 1000>}, {pipeline_mode = #tpu.pipeline_mode<synchronous>, transform_indices = @transform_3, window_bounds = array<i64: 1000, 256>}, {pipeline_mode = #tpu.pipeline_mode<synchronous>, transform_indices = @transform_4, window_bounds = array<i64: 1, 256>}, {pipeline_mode = #tpu.pipeline_mode<synchronous>, transform_indices = @transform_5, window_bounds = array<i64: 256, 2>}, {pipeline_mode = #tpu.pipeline_mode<synchronous>, transform_indices = @transform_6, window_bounds = array<i64: 1, 2>}, {pipeline_mode = #tpu.pipeline_mode<synchronous>, transform_indices = @transform_7, window_bounds = array<i64: 256, 9>}, {pipeline_mode = #tpu.pipeline_mode<synchronous>, transform_indices = @transform_8, window_bounds = array<i64: 1, 9>}, {transform_indices = @transform_9, window_bounds = array<i64: 2, 2>}, {transform_indices = @transform_10, window_bounds = array<i64: 2, 9>}]} {
    %c0_i32 = arith.constant 0 : i32
    %0 = arith.cmpi eq, %arg1, %c0_i32 : i32
    %1 = arith.extui %0 : i1 to i32
    %c0_i32_0 = arith.constant 0 : i32
    %2 = arith.cmpi ne, %1, %c0_i32_0 : i32
    scf.if %2 {
      %cst_9 = arith.constant 0.000000e+00 : f32
      %11 = vector.broadcast %cst_9 : f32 to vector<2x4xf32>
      %c0_10 = arith.constant 0 : index
      %c0_11 = arith.constant 0 : index
      %12 = vector.load %arg13[%c0_10, %c0_11] : memref<2x4xf32, #tpu.memory_space<vmem>>, vector<2x4xf32>
      tpu.vector_store %arg13[%c0_10, %c0_11], %11 {strides = array<i32>} : memref<2x4xf32, #tpu.memory_space<vmem>>, vector<2x4xf32>,
    } else {
    }
    %c0 = arith.constant 0 : index
    %c0_1 = arith.constant 0 : index
    %c0_2 = arith.constant 0 : index
    %3 = vector.load %arg2[%c0, %c0_1, %c0_2] : memref<2x4x256xf32, #tpu.memory_space<vmem>>, vector<2x4x256xf32>
    %c0_3 = arith.constant 0 : index
    %c0_4 = arith.constant 0 : index
    %4 = vector.load %arg13[%c0_3, %c0_4] : memref<2x4xf32, #tpu.memory_space<vmem>>, vector<2x4xf32>
    %cst = arith.constant dense<0.000000e+00> : vector<2x4xf32>
    %5 = vector.multi_reduction <add>, %3, %cst [2] : vector<2x4x256xf32> to vector<2x4xf32>
    %6 = arith.addf %4, %5 : vector<2x4xf32>
    %c0_5 = arith.constant 0 : index
    %c0_6 = arith.constant 0 : index
    %7 = vector.load %arg13[%c0_5, %c0_6] : memref<2x4xf32, #tpu.memory_space<vmem>>, vector<2x4xf32>
    tpu.vector_store %arg13[%c0_5, %c0_6], %6 {strides = array<i32>} : memref<2x4xf32, #tpu.memory_space<vmem>>, vector<2x4xf32>,
    %c0_i32_7 = arith.constant 0 : i32
    %8 = arith.cmpi eq, %arg1, %c0_i32_7 : i32
    %9 = arith.extui %8 : i1 to i32
    %c0_i32_8 = arith.constant 0 : i32
    %10 = arith.cmpi ne, %9, %c0_i32_8 : i32
    scf.if %10 {
      %c0_9 = arith.constant 0 : index
      %c0_10 = arith.constant 0 : index
      %11 = vector.load %arg13[%c0_9, %c0_10] : memref<2x4xf32, #tpu.memory_space<vmem>>, vector<2x4xf32>
      %cst_11 = arith.constant 3.906250e-03 : f32
      %12 = vector.broadcast %cst_11 : f32 to vector<2x4xf32>
      %13 = arith.mulf %11, %12 : vector<2x4xf32>
      %c0_12 = arith.constant 0 : index
      %c0_13 = arith.constant 0 : index
      %14 = vector.load %arg3[%c0_12, %c0_13] : memref<4x1000xf32, #tpu.memory_space<vmem>>, vector<4x1000xf32>
      %cst_14 = arith.constant dense<0.000000e+00> : vector<2x1000xf32>
      %15 = tpu.matmul %13, %14, %cst_14 {dimension_numbers = #tpu.dot_dimension_numbers<[1], [0], [0], [1], [0, 0, 1, 1], [], []>} : vector<2x4xf32>, vector<4x1000xf32>, vector<2x1000xf32> -> vector<2x1000xf32>
      %c0_15 = arith.constant 0 : index
      %c0_16 = arith.constant 0 : index
      %16 = vector.load %arg4[%c0_15, %c0_16] : memref<1x1000xf32, #tpu.memory_space<vmem>>, vector<1x1000xf32>
      %17 = vector.broadcast %16 : vector<1x1000xf32> to vector<2x1000xf32>
      %18 = arith.addf %15, %17 : vector<2x1000xf32>
      %cst_17 = arith.constant 0.000000e+00 : f32
      %19 = vector.broadcast %cst_17 : f32 to vector<2x1000xf32>
      %20 = arith.maximumf %18, %19 : vector<2x1000xf32>
      %c0_18 = arith.constant 0 : index
      %c0_19 = arith.constant 0 : index
      %21 = vector.load %arg5[%c0_18, %c0_19] : memref<1000x256xf32, #tpu.memory_space<vmem>>, vector<1000x256xf32>
      %cst_20 = arith.constant dense<0.000000e+00> : vector<2x256xf32>
      %22 = tpu.matmul %20, %21, %cst_20 {dimension_numbers = #tpu.dot_dimension_numbers<[1], [0], [0], [1], [0, 0, 1, 1], [], []>} : vector<2x1000xf32>, vector<1000x256xf32>, vector<2x256xf32> -> vector<2x256xf32>
      %c0_21 = arith.constant 0 : index
      %c0_22 = arith.constant 0 : index
      %23 = vector.load %arg6[%c0_21, %c0_22] : memref<1x256xf32, #tpu.memory_space<vmem>>, vector<1x256xf32>
      %24 = vector.broadcast %23 : vector<1x256xf32> to vector<2x256xf32>
      %25 = arith.addf %22, %24 : vector<2x256xf32>
      %c0_23 = arith.constant 0 : index
      %c0_24 = arith.constant 0 : index
      %26 = vector.load %arg7[%c0_23, %c0_24] : memref<256x2xf32, #tpu.memory_space<vmem>>, vector<256x2xf32>
      %cst_25 = arith.constant dense<0.000000e+00> : vector<2x2xf32>
      %27 = tpu.matmul %25, %26, %cst_25 {dimension_numbers = #tpu.dot_dimension_numbers<[1], [0], [0], [1], [0, 0, 1, 1], [], []>} : vector<2x256xf32>, vector<256x2xf32>, vector<2x2xf32> -> vector<2x2xf32>
      %c0_26 = arith.constant 0 : index
      %c0_27 = arith.constant 0 : index
      %28 = vector.load %arg8[%c0_26, %c0_27] : memref<1x2xf32, #tpu.memory_space<vmem>>, vector<1x2xf32>
      %29 = vector.broadcast %28 : vector<1x2xf32> to vector<2x2xf32>
      %30 = arith.addf %27, %29 : vector<2x2xf32>
      %c0_28 = arith.constant 0 : index
      %c0_29 = arith.constant 0 : index
      %31 = vector.load %arg11[%c0_28, %c0_29] : memref<2x2xf32, #tpu.memory_space<vmem>>, vector<2x2xf32>
      tpu.vector_store %arg11[%c0_28, %c0_29], %30 {strides = array<i32>} : memref<2x2xf32, #tpu.memory_space<vmem>>, vector<2x2xf32>,
      %c0_30 = arith.constant 0 : index
      %c0_31 = arith.constant 0 : index
      %32 = vector.load %arg9[%c0_30, %c0_31] : memref<256x9xf32, #tpu.memory_space<vmem>>, vector<256x9xf32>
      %cst_32 = arith.constant dense<0.000000e+00> : vector<2x9xf32>
      %33 = tpu.matmul %25, %32, %cst_32 {dimension_numbers = #tpu.dot_dimension_numbers<[1], [0], [0], [1], [0, 0, 1, 1], [], []>} : vector<2x256xf32>, vector<256x9xf32>, vector<2x9xf32> -> vector<2x9xf32>
      %c0_33 = arith.constant 0 : index
      %c0_34 = arith.constant 0 : index
      %34 = vector.load %arg10[%c0_33, %c0_34] : memref<1x9xf32, #tpu.memory_space<vmem>>, vector<1x9xf32>
      %35 = vector.broadcast %34 : vector<1x9xf32> to vector<2x9xf32>
      %36 = arith.addf %33, %35 : vector<2x9xf32>
      %c0_35 = arith.constant 0 : index
      %c0_36 = arith.constant 0 : index
      %37 = vector.load %arg12[%c0_35, %c0_36] : memref<2x9xf32, #tpu.memory_space<vmem>>, vector<2x9xf32>
      tpu.vector_store %arg12[%c0_35, %c0_36], %36 {strides = array<i32>} : memref<2x9xf32, #tpu.memory_space<vmem>>, vector<2x9xf32>,
    } else {
    }
    return
  }
  func.func @transform_0(%arg0: i32, %arg1: i32) -> (i32, i32, i32) {
    %c0_i32 = arith.constant 0 : i32
    %c0_i32_0 = arith.constant 0 : i32
    return %arg0, %c0_i32, %arg1 : i32, i32, i32
  }
  func.func @transform_1(%arg0: i32, %arg1: i32) -> (i32, i32) {
    %c0_i32 = arith.constant 0 : i32
    %c0_i32_0 = arith.constant 0 : i32
    %c0_i32_1 = arith.constant 0 : i32
    return %c0_i32, %c0_i32_0 : i32, i32
  }
  func.func @transform_2(%arg0: i32, %arg1: i32) -> (i32, i32) {
    %c0_i32 = arith.constant 0 : i32
    %c0_i32_0 = arith.constant 0 : i32
    %c0_i32_1 = arith.constant 0 : i32
    return %c0_i32, %c0_i32_0 : i32, i32
  }
  func.func @transform_3(%arg0: i32, %arg1: i32) -> (i32, i32) {
    %c0_i32 = arith.constant 0 : i32
    %c0_i32_0 = arith.constant 0 : i32
    %c0_i32_1 = arith.constant 0 : i32
    return %c0_i32, %c0_i32_0 : i32, i32
  }
  func.func @transform_4(%arg0: i32, %arg1: i32) -> (i32, i32) {
    %c0_i32 = arith.constant 0 : i32
    %c0_i32_0 = arith.constant 0 : i32
    %c0_i32_1 = arith.constant 0 : i32
    return %c0_i32, %c0_i32_0 : i32, i32
  }
  func.func @transform_5(%arg0: i32, %arg1: i32) -> (i32, i32) {
    %c0_i32 = arith.constant 0 : i32
    %c0_i32_0 = arith.constant 0 : i32
    %c0_i32_1 = arith.constant 0 : i32
    return %c0_i32, %c0_i32_0 : i32, i32
  }
  func.func @transform_6(%arg0: i32, %arg1: i32) -> (i32, i32) {
    %c0_i32 = arith.constant 0 : i32
    %c0_i32_0 = arith.constant 0 : i32
    %c0_i32_1 = arith.constant 0 : i32
    return %c0_i32, %c0_i32_0 : i32, i32
  }
  func.func @transform_7(%arg0: i32, %arg1: i32) -> (i32, i32) {
    %c0_i32 = arith.constant 0 : i32
    %c0_i32_0 = arith.constant 0 : i32
    %c0_i32_1 = arith.constant 0 : i32
    return %c0_i32, %c0_i32_0 : i32, i32
  }
  func.func @transform_8(%arg0: i32, %arg1: i32) -> (i32, i32) {
    %c0_i32 = arith.constant 0 : i32
    %c0_i32_0 = arith.constant 0 : i32
    %c0_i32_1 = arith.constant 0 : i32
    return %c0_i32, %c0_i32_0 : i32, i32
  }
  func.func @transform_9(%arg0: i32, %arg1: i32) -> (i32, i32) {
    %c0_i32 = arith.constant 0 : i32
    %c0_i32_0 = arith.constant 0 : i32
    return %arg0, %c0_i32 : i32, i32
  }
  func.func @transform_10(%arg0: i32, %arg1: i32) -> (i32, i32) {
    %c0_i32 = arith.constant 0 : i32
    %c0_i32_0 = arith.constant 0 : i32
    return %arg0, %c0_i32 : i32, i32
  }
}

</mosaic_0001>

<bundles_post_ra>
// kernel: tpu_custom_call.1
= control target key start
LH: loop header
LB: loop body
LE: loop exit
PB: predicated region body
PF: predicated region fallthrough
CT: control target
= control target key end

     0   :  { %16 = vsyncpa [#allocation4], 0  ;;  %s2140_s0 = inlined_call_operand.vmem [shape: f32[2,4,256], index: 0, kind: input, shape index: {}]   ;;  %s2141_s1 = inlined_call_operand.vmem [shape: f32[4,1000], index: 1, kind: input, shape index: {}]   ;;  %s2142_s2 = inlined_call_operand.vmem [shape: f32[1,1000], index: 2, kind: input, shape index: {}]   ;;  %s2143_s3 = inlined_call_operand.hbm [shape: f32[1000,256], index: 3, kind: input, shape index: {}]   ;;  %s2144_s4 = inlined_call_operand.vmem [shape: f32[1,256], index: 4, kind: input, shape index: {}]   ;;  %s2145_s5 = inlined_call_operand.vmem [shape: f32[256,2], index: 5, kind: input, shape index: {}]   ;;  %s2146_s6 = inlined_call_operand.vmem [shape: f32[1,2], index: 6, kind: input, shape index: {}]   ;;  %s2147_s7 = inlined_call_operand.vmem [shape: f32[256,9], index: 7, kind: input, shape index: {}]   ;;  %s2148_s8 = inlined_call_operand.vmem [shape: f32[1,9], index: 8, kind: input, shape index: {}]   ;;  %s2149_s9 = inlined_call_operand.hbm [shape: f32[2,2], index: 9, kind: output, shape index: {0}]   ;;  %s2150_s10 = inlined_call_operand.hbm [shape: f32[2,9], index: 10, kind: output, shape index: {1}]  }
   0x1   :  { %17 = vsyncpa [#allocation5], 0 }
   0x2   :  { %18 = vsyncpa [#allocation8], 0  ;;  %s1755_s13 = smov [#allocation3]   ;;  %s1683_s17 = scalar_lea.hbm %s2143_s3, 32000 }
   0x3   :  { %s30_s14 = sshll.u32 %s1755_s13, 4  ;;  %p1684_p0 = scmp.ne.s32.totalorder %s2143_s3, %s1683_s17  ;;  %s31_s14 = int_to_ptr.vmem [resolvable:$true] %s30_s14 }
   0x4   :  { %p1687_p1 = scmp.lt.u32.totalorder %s1683_s17, %s2143_s3 }
   0x6   :  { %p1689_p2 = pnand %p1687_p1, %p1684_p0 }
   0x8   :  { %1692 = shalt.err (!%p1689_p2)
}
   0x9   :  { %s1693_s22 = scalar_lea.vmem %s31_s14, 32000  ;;  %p1698_p4 = scmp.lt.s32.totalorder %s31_s14, %s31_s14 }
   0xa   :  { %p1694_p3 = scmp.ne.s32.totalorder %s31_s14, %s1693_s22  ;;  %p1699_p5 = scmp.lt.s32.totalorder %s1693_s22, %s1693_s22 }
   0xc   :  { %p1700_p6 = por %p1699_p5, %p1698_p4 }
   0xe   :  { %p1701_p7 = pnand %p1700_p6, %p1694_p3 }
  0x10   :  { %1704 = shalt.err (!%p1701_p7)
}
  0x11   :  { %s1756_s23 = smov 256   ;;  %s1757_s24 = smov 16  }
  0x12   :  { %36 = dma.hbm_to_vmem [thread:$0]  %s2143_s3, 32000, %s31_s14, [#allocation4], %s1756_s23, %s1756_s23, %s1757_s24  }
  0x13   :  { %1749 = dma.done.wait [#allocation4], 32000  }
  0x14   :  { %1750 = vsyncadd [#allocation4], 4294935296  ;;  %vm65_vm0 = vcmask 1043456   ;;  %v56_v0 = vld [vmem:[%s2140_s0] sm:$0xff]  ;;  %v57_v1 = vld [vmem:[%s2140_s0 + $0x8] sm:$0xff]  ;;  %vm54_vm1 = vcmask 25600  }
  0x15   :  { %v61_v2 = vcombine.high %v56_v0, %v56_v0  ;;  %v66_v3 = vsel %vm65_vm0, %v56_v0, 0.0  ;;  %v62_v4 = vcombine.high %v57_v1, %v57_v1  ;;  %v71_v6 = vsel %vm65_vm0, %v57_v1, 0.0  ;;  %v99_v11 = vld [vmem:[%s2141_s1] sm:$0xff]  ;;  %v1848_v13 = vld [vmem:[%s2141_s1 + $0x8] sm:$0xff]  ;;  %v531_v19 = vld [vmem:[#allocation3 + $0x210] sm:$0xff]  ;;  %s1759_s23 = smov [#allocation6]  }
  0x16   :  { %v1758_v10 = vmov 0.0   ;;  %v149_v12 = vcombine.high %v99_v11, %v99_v11  ;;  %v150_v14 = vcombine.high %v1848_v13, %v1848_v13  ;;  %v530_v15 = vld [vmem:[#allocation3 + $0x208] sm:$0xff]  ;;  %v532_v16 = vld [vmem:[#allocation3 + $0x218] sm:$0xff]  ;;  %v529_v18 = vld [vmem:[#allocation3 + $0x200] sm:$0xff]  ;;  %vm88_vm2 = vcmask 1041409   ;;  %s1243_s24 = sshll.u32 %s1759_s23, 4  ;;  %s1244_s24 = int_to_ptr.vmem [resolvable:$true] %s1243_s24 }
  0x17   :  { %v67_v5 = vsel %vm65_vm0, %v61_v2, 0.0  ;;  %v72_v7 = vsel %vm65_vm0, %v62_v4, 0.0  ;;  %55 = vst.msk [vmem:[#allocation2] sm:$0x3] %vm54_vm1, %v1758_v10  ;;  %237 = vmatprep.mubr.f32.mxu1 %v1758_v10  ;;  %v1415_v17 = vpack.c.bf16 %v532_v16, %v530_v15  ;;  %v1417_v20 = vpack.c.bf16 %v531_v19, %v529_v18  ;;  %v534_v21 = vld [vmem:[#allocation3 + $0x228] sm:$0xff]  ;;  %v536_v22 = vld [vmem:[#allocation3 + $0x238] sm:$0xff]  ;;  %p1710_p9 = scmp.lt.s32.totalorder %s1244_s24, %s1244_s24 }
  0x18   :  { %v68_v8 = vadd.f32 %v67_v5, %v66_v3  ;;  %v73_v9 = vadd.f32 %v72_v7, %v71_v6  ;;  %1266 = vmatprep.subr.msk.mxu1 %vm65_vm0, %v149_v12  ;;  %v1419_v23 = vpack.c.bf16 %v536_v22, %v534_v21  ;;  %v533_v24 = vld [vmem:[#allocation3 + $0x220] sm:$0xff]  ;;  %v535_v25 = vld [vmem:[#allocation3 + $0x230] sm:$0xff]  ;;  %v538_v27 = vld [vmem:[#allocation3 + $0x248] sm:$0xff]  ;;  %vm153_vm3 = vcmask 31744   ;;  %s1705_s25 = scalar_lea.vmem %s1244_s24, 32 }
  0x19   :  { %1267 = vmatpush1.msk.msra.mxu1 %vm65_vm0, %v99_v11  ;;  %1416 = vmatprep.subr.bf16.mxu0 %v1415_v17  ;;  %v1421_v26 = vpack.c.bf16 %v535_v25, %v533_v24  ;;  %v540_v28 = vld [vmem:[#allocation3 + $0x258] sm:$0xff]  ;;  %v537_v30 = vld [vmem:[#allocation3 + $0x240] sm:$0xff]  ;;  %v539_v31 = vld [vmem:[#allocation3 + $0x250] sm:$0xff]  ;;  %vm727_vm4 = vcmask 850944   ;;  %vm1124_vm5 = vcmask 9216   ;;  %p1706_p8 = scmp.ne.s32.totalorder %s1244_s24, %s1705_s25  ;;  %p1711_p10 = scmp.lt.s32.totalorder %s1705_s25, %s1705_s25 }
  0x1a   :  { %69 = vadd.xlane.f32.xlu0 %v68_v8  ;;  %1269 = vmatprep.subr.msk.mxu1 %vm65_vm0, %v150_v14  ;;  %v1423_v29 = vpack.c.bf16 %v540_v28, %v538_v27  ;;  %v1425_v32 = vpack.c.bf16 %v539_v31, %v537_v30  ;;  %v542_v33 = vld [vmem:[#allocation3 + $0x268] sm:$0xff]  ;;  %v544_v34 = vld [vmem:[#allocation3 + $0x278] sm:$0xff]  ;;  %v541_v36 = vld [vmem:[#allocation3 + $0x260] sm:$0xff] }
  0x1b   :  { %1418 = vmatpush1.bf16.msra.mxu0 %v1417_v20  ;;  %v1427_v35 = vpack.c.bf16 %v544_v34, %v542_v33  ;;  %v543_v37 = vld [vmem:[#allocation3 + $0x270] sm:$0xff]  ;;  %v546_v39 = vld [vmem:[#allocation3 + $0x288] sm:$0xff]  ;;  %v548_v40 = vld [vmem:[#allocation3 + $0x298] sm:$0xff]  ;;  %p1712_p11 = por %p1711_p10, %p1710_p9 }
  0x1c   :  { %1420 = vmatprep.subr.bf16.mxu0 %v1419_v23  ;;  %v1429_v38 = vpack.c.bf16 %v543_v37, %v541_v36  ;;  %v1431_v41 = vpack.c.bf16 %v548_v40, %v546_v39  ;;  %v545_v42 = vld [vmem:[#allocation3 + $0x280] sm:$0xff]  ;;  %v547_v43 = vld [vmem:[#allocation3 + $0x290] sm:$0xff]  ;;  %v550_v45 = vld [vmem:[#allocation3 + $0x2a8] sm:$0xff]  ;;  %v78_v37 = vlaneseq }
  0x1d   :  { %v1433_v44 = vpack.c.bf16 %v547_v43, %v545_v42  ;;  %v552_v46 = vld [vmem:[#allocation3 + $0x2b8] sm:$0xff]  ;;  %v549_v48 = vld [vmem:[#allocation3 + $0x2a0] sm:$0xff]  ;;  %v551_v49 = vld [vmem:[#allocation3 + $0x2b0] sm:$0xff]  ;;  %p1713_p12 = pnand %p1712_p11, %p1706_p8 }
  0x1e   :  { %74 = vadd.xlane.f32.xlu0 %v73_v9  ;;  %v1435_v47 = vpack.c.bf16 %v552_v46, %v550_v45  ;;  %v1437_v50 = vpack.c.bf16 %v551_v49, %v549_v48  ;;  %v554_v51 = vld [vmem:[#allocation3 + $0x2c8] sm:$0xff]  ;;  %v556_v52 = vld [vmem:[#allocation3 + $0x2d8] sm:$0xff]  ;;  %v553_v54 = vld [vmem:[#allocation3 + $0x2c0] sm:$0xff]  ;;  %v1854_v39 = vshrl.u32 %v78_v37, 7 }
  0x1f   :  { %1422 = vmatpush1.bf16.msra.mxu0 %v1421_v26  ;;  %v1439_v53 = vpack.c.bf16 %v556_v52, %v554_v51  ;;  %v555_v55 = vld [vmem:[#allocation3 + $0x2d0] sm:$0xff]  ;;  %v558_v57 = vld [vmem:[#allocation3 + $0x2e8] sm:$0xff]  ;;  %v560_v58 = vld [vmem:[#allocation3 + $0x2f8] sm:$0xff] }
  0x20   :  { %1424 = vmatprep.subr.bf16.mxu0 %v1423_v29  ;;  %v1441_v56 = vpack.c.bf16 %v555_v55, %v553_v54  ;;  %v1443_v59 = vpack.c.bf16 %v560_v58, %v558_v57  ;;  %v557_v60 = vld [vmem:[#allocation3 + $0x2e0] sm:$0xff]  ;;  %v559_v61 = vld [vmem:[#allocation3 + $0x2f0] sm:$0xff]  ;;  %v562_v63 = vld [vmem:[#allocation3 + $0x308] sm:$0xff] }
  0x21   :  { %v1445_v62 = vpack.c.bf16 %v559_v61, %v557_v60  ;;  %v564_v0 = vld [vmem:[#allocation3 + $0x318] sm:$0xff]  ;;  %v561_v2 = vld [vmem:[#allocation3 + $0x300] sm:$0xff]  ;;  %v563_v3 = vld [vmem:[#allocation3 + $0x310] sm:$0xff] }
  0x22   :  { %v1447_v1 = vpack.c.bf16 %v564_v0, %v562_v63  ;;  %v1449_v4 = vpack.c.bf16 %v563_v3, %v561_v2  ;;  %v566_v5 = vld [vmem:[#allocation3 + $0x328] sm:$0xff]  ;;  %v568_v6 = vld [vmem:[#allocation3 + $0x338] sm:$0xff]  ;;  %v565_v8 = vld [vmem:[#allocation3 + $0x320] sm:$0xff] }
  0x23   :  { %1426 = vmatpush1.bf16.msra.mxu0 %v1425_v32  ;;  %v1451_v7 = vpack.c.bf16 %v568_v6, %v566_v5  ;;  %v567_v9 = vld [vmem:[#allocation3 + $0x330] sm:$0xff]  ;;  %v570_v12 = vld [vmem:[#allocation3 + $0x348] sm:$0xff]  ;;  %v572_v14 = vld [vmem:[#allocation3 + $0x358] sm:$0xff] }
  0x24   :  { %1428 = vmatprep.subr.bf16.mxu0 %v1427_v35  ;;  %v1453_v11 = vpack.c.bf16 %v567_v9, %v565_v8  ;;  %v1455_v15 = vpack.c.bf16 %v572_v14, %v570_v12  ;;  %v569_v16 = vld [vmem:[#allocation3 + $0x340] sm:$0xff]  ;;  %v571_v17 = vld [vmem:[#allocation3 + $0x350] sm:$0xff]  ;;  %v574_v19 = vld [vmem:[#allocation3 + $0x368] sm:$0xff] }
  0x25   :  { %v1457_v18 = vpack.c.bf16 %v571_v17, %v569_v16  ;;  %v576_v20 = vld [vmem:[#allocation3 + $0x378] sm:$0xff]  ;;  %v573_v22 = vld [vmem:[#allocation3 + $0x360] sm:$0xff]  ;;  %v575_v23 = vld [vmem:[#allocation3 + $0x370] sm:$0xff] }
  0x26   :  { %v1459_v21 = vpack.c.bf16 %v576_v20, %v574_v19  ;;  %v1461_v24 = vpack.c.bf16 %v575_v23, %v573_v22  ;;  %v578_v25 = vld [vmem:[#allocation3 + $0x388] sm:$0xff]  ;;  %v580_v26 = vld [vmem:[#allocation3 + $0x398] sm:$0xff]  ;;  %v577_v28 = vld [vmem:[#allocation3 + $0x380] sm:$0xff] }
  0x27   :  { %1430 = vmatpush1.bf16.msra.mxu0 %v1429_v38  ;;  %v1463_v27 = vpack.c.bf16 %v580_v26, %v578_v25  ;;  %v579_v29 = vld [vmem:[#allocation3 + $0x390] sm:$0xff]  ;;  %v582_v31 = vld [vmem:[#allocation3 + $0x3a8] sm:$0xff]  ;;  %v584_v32 = vld [vmem:[#allocation3 + $0x3b8] sm:$0xff]  ;;  %v79_v38 = vand.u32 127, %v78_v37 }
  0x28   :  { %1432 = vmatprep.subr.bf16.mxu0 %v1431_v41  ;;  %v1465_v30 = vpack.c.bf16 %v579_v29, %v577_v28  ;;  %v1467_v33 = vpack.c.bf16 %v584_v32, %v582_v31  ;;  %v581_v34 = vld [vmem:[#allocation3 + $0x3a0] sm:$0xff]  ;;  %v583_v35 = vld [vmem:[#allocation3 + $0x3b0] sm:$0xff]  ;;  %v58_v45 = vld [vmem:[#allocation2] sm:$0x3] }
  0x29   :  { %v1469_v36 = vpack.c.bf16 %v583_v35, %v581_v34  ;;  %v82_v41 = vsub.s32 %v79_v38, %v1854_v39  ;;  %v101_v48 = vld [vmem:[%s2141_s1 + $0x10] sm:$0xff]  ;;  %v102_v52 = vld [vmem:[%s2141_s1 + $0x18] sm:$0xff]  ;;  %v465_v57 = vld [vmem:[#allocation3] sm:$0xff] }
  0x2a   :  { %v151_v51 = vcombine.high %v101_v48, %v101_v48  ;;  %v466_v54 = vld [vmem:[#allocation3 + $0x8] sm:$0xff]  ;;  %v468_v55 = vld [vmem:[#allocation3 + $0x18] sm:$0xff]  ;;  %v467_v58 = vld [vmem:[#allocation3 + $0x10] sm:$0xff] }
  0x2b   :  { %1434 = vmatpush1.bf16.msra.mxu0 %v1433_v44  ;;  %v1353_v60 = vpack.c.bf16 %v467_v58, %v465_v57  ;;  %v471_v63 = vld [vmem:[#allocation3 + $0x30] sm:$0xff]  ;;  %v474_v0 = vld [vmem:[#allocation3 + $0x48] sm:$0xff]  ;;  %v477_v9 = vld [vmem:[#allocation3 + $0x60] sm:$0xff] }
  0x2c   :  { %1436 = vmatprep.subr.bf16.mxu0 %v1435_v47  ;;  %v475_v5 = vld [vmem:[#allocation3 + $0x50] sm:$0xff]  ;;  %v478_v6 = vld [vmem:[#allocation3 + $0x68] sm:$0xff]  ;;  %v484_v14 = vld [vmem:[#allocation3 + $0x98] sm:$0xff] }
  0x2d   :  { %v482_v12 = vld [vmem:[#allocation3 + $0x88] sm:$0xff]  ;;  %v481_v17 = vld [vmem:[#allocation3 + $0x80] sm:$0xff]  ;;  %v488_v20 = vld [vmem:[#allocation3 + $0xb8] sm:$0xff] }
  0x2e   :  { %v1367_v16 = vpack.c.bf16 %v484_v14, %v482_v12  ;;  %v486_v19 = vld [vmem:[#allocation3 + $0xa8] sm:$0xff]  ;;  %v485_v23 = vld [vmem:[#allocation3 + $0xa0] sm:$0xff]  ;;  %v492_v26 = vld [vmem:[#allocation3 + $0xd8] sm:$0xff] }
  0x2f   :  { %1438 = vmatpush1.bf16.msra.mxu0 %v1437_v50  ;;  %v1371_v22 = vpack.c.bf16 %v488_v20, %v486_v19  ;;  %v490_v25 = vld [vmem:[#allocation3 + $0xc8] sm:$0xff]  ;;  %v489_v29 = vld [vmem:[#allocation3 + $0xc0] sm:$0xff]  ;;  %v496_v32 = vld [vmem:[#allocation3 + $0xf8] sm:$0xff] }
  0x30   :  { %1440 = vmatprep.subr.bf16.mxu0 %v1439_v53  ;;  %v152_v53 = vcombine.high %v102_v52, %v102_v52  ;;  %v1375_v28 = vpack.c.bf16 %v492_v26, %v490_v25  ;;  %v494_v31 = vld [vmem:[#allocation3 + $0xe8] sm:$0xff]  ;;  %v493_v35 = vld [vmem:[#allocation3 + $0xe0] sm:$0xff]  ;;  %v500_v38 = vld [vmem:[#allocation3 + $0x118] sm:$0xff] }
  0x31   :  { %v1379_v34 = vpack.c.bf16 %v496_v32, %v494_v31  ;;  %v498_v37 = vld [vmem:[#allocation3 + $0x108] sm:$0xff]  ;;  %v512_v57 = vld [vmem:[#allocation3 + $0x178] sm:$0xff]  ;;  %v521_v14 = vld [vmem:[#allocation3 + $0x1c0] sm:$0xff] }
  0x32   :  { %v526_v20 = vld [vmem:[#allocation3 + $0x1e8] sm:$0xff]  ;;  %v525_v25 = vld [vmem:[#allocation3 + $0x1e0] sm:$0xff]  ;;  %v527_v26 = vld [vmem:[#allocation3 + $0x1f0] sm:$0xff] }
  0x33   :  { %1442 = vmatpush1.bf16.msra.mxu0 %v1441_v56  ;;  %v1351_v56 = vpack.c.bf16 %v468_v55, %v466_v54  ;;  %v505_v54 = vld [vmem:[#allocation3 + $0x140] sm:$0xff]  ;;  %v507_v55 = vld [vmem:[#allocation3 + $0x150] sm:$0xff] }
  0x34   :  { %1444 = vmatprep.subr.bf16.mxu0 %v1443_v59  ;;  %v470_v59 = vld [vmem:[#allocation3 + $0x28] sm:$0xff]  ;;  %v1393_v58 = vpack.c.bf16 %v507_v55, %v505_v54  ;;  %v589_v32 = vld [vmem:[#allocation3 + $0x3e0] sm:$0xff] }
  0x37   :  { %1446 = vmatpush1.bf16.msra.mxu0 %v1445_v62  ;;  %v469_v62 = vld [vmem:[#allocation3 + $0x20] sm:$0xff] }
  0x38   :  { %1448 = vmatprep.subr.bf16.mxu0 %v1447_v1  ;;  %v476_v1 = vld [vmem:[#allocation3 + $0x58] sm:$0xff]  ;;  %v1357_v2 = vpack.c.bf16 %v471_v63, %v469_v62 }
  0x39   :  { %v1359_v3 = vpack.c.bf16 %v476_v1, %v474_v0  ;;  %v516_v62 = vld [vmem:[#allocation3 + $0x198] sm:$0xff]  ;;  %v513_v1 = vld [vmem:[#allocation3 + $0x180] sm:$0xff] }
  0x3b   :  { %1450 = vmatpush1.bf16.msra.mxu0 %v1449_v4  ;;  %v473_v4 = vld [vmem:[#allocation3 + $0x40] sm:$0xff] }
  0x3c   :  { %1452 = vmatprep.subr.bf16.mxu0 %v1451_v7  ;;  %v480_v7 = vld [vmem:[#allocation3 + $0x78] sm:$0xff]  ;;  %v1361_v8 = vpack.c.bf16 %v475_v5, %v473_v4 }
  0x3d   :  { %v520_v4 = vld [vmem:[#allocation3 + $0x1b8] sm:$0xff] }
  0x3f   :  { %1454 = vmatpush1.bf16.msra.mxu0 %v1453_v11  ;;  %v479_v11 = vld [vmem:[#allocation3 + $0x70] sm:$0xff] }
  0x40   :  { %1456 = vmatprep.subr.bf16.mxu0 %v1455_v15  ;;  %v1365_v15 = vpack.c.bf16 %v479_v11, %v477_v9  ;;  %v524_v9 = vld [vmem:[#allocation3 + $0x1d8] sm:$0xff] }
  0x43   :  { %1458 = vmatpush1.bf16.msra.mxu0 %v1457_v18  ;;  %v483_v18 = vld [vmem:[#allocation3 + $0x90] sm:$0xff] }
  0x44   :  { %1460 = vmatprep.subr.bf16.mxu0 %v1459_v21  ;;  %v1369_v21 = vpack.c.bf16 %v483_v18, %v481_v17  ;;  %v586_v17 = vld [vmem:[#allocation3 + $0x3c8] sm:$0xff]  ;;  %v588_v18 = vld [vmem:[#allocation3 + $0x3d8] sm:$0xff] }
  0x45   :  { %v1471_v19 = vpack.c.bf16 %v588_v18, %v586_v17  ;;  %v603_v17 = vld [vmem:[#allocation3 + $0x450] sm:$0xff]  ;;  %v606_v18 = vld [vmem:[#allocation3 + $0x468] sm:$0xff] }
  0x47   :  { %1462 = vmatpush1.bf16.msra.mxu0 %v1461_v24  ;;  %v487_v24 = vld [vmem:[#allocation3 + $0xb0] sm:$0xff] }
  0x48   :  { %1464 = vmatprep.subr.bf16.mxu0 %v1463_v27  ;;  %v1373_v27 = vpack.c.bf16 %v487_v24, %v485_v23  ;;  %v587_v24 = vld [vmem:[#allocation3 + $0x3d0] sm:$0xff] }
  0x4b   :  { %1466 = vmatpush1.bf16.msra.mxu0 %v1465_v30  ;;  %v491_v30 = vld [vmem:[#allocation3 + $0xd0] sm:$0xff] }
  0x4c   :  { %1468 = vmatprep.subr.bf16.mxu0 %v1467_v33  ;;  %v1377_v33 = vpack.c.bf16 %v491_v30, %v489_v29  ;;  %v590_v29 = vld [vmem:[#allocation3 + $0x3e8] sm:$0xff]  ;;  %v592_v30 = vld [vmem:[#allocation3 + $0x3f8] sm:$0xff] }
  0x4d   :  { %v1475_v31 = vpack.c.bf16 %v592_v30, %v590_v29  ;;  %v611_v29 = vld [vmem:[#allocation3 + $0x490] sm:$0xff]  ;;  %v614_v30 = vld [vmem:[#allocation3 + $0x4a8] sm:$0xff] }
  0x4f   :  { %1470 = vmatpush1.bf16.msra.mxu0 %v1469_v36  ;;  %v495_v36 = vld [vmem:[#allocation3 + $0xf0] sm:$0xff] }
  0x50   :  { %1472 = vmatprep.subr.bf16.mxu0 %v1471_v19  ;;  %v608_v19 = vld [vmem:[#allocation3 + $0x478] sm:$0xff] }
  0xa7   :  { %v70_v40 = vpop.xlane.xlu0 %69 }
  0xa8   :  { %v83_v43 = vrot.slane %v70_v40, %v82_v41  ;;  %v1381_v40 = vpack.c.bf16 %v495_v36, %v493_v35  ;;  %v594_v35 = vld [vmem:[#allocation3 + $0x408] sm:$0xff]  ;;  %v596_v36 = vld [vmem:[#allocation3 + $0x418] sm:$0xff] }
  0xab   :  { %v75_v42 = vpop.xlane.xlu0 %74 }
  0xac   :  { %v87_v44 = vrot.slane %v75_v42, %v82_v41  ;;  %v1383_v41 = vpack.c.bf16 %v500_v38, %v498_v37  ;;  %v497_v42 = vld [vmem:[#allocation3 + $0x100] sm:$0xff]  ;;  %v1479_v37 = vpack.c.bf16 %v596_v36, %v594_v35  ;;  %v107_v38 = vsub.s32 0, %v1854_v39  ;;  %v615_v35 = vld [vmem:[#allocation3 + $0x4b0] sm:$0xff]  ;;  %v618_v36 = vld [vmem:[#allocation3 + $0x4c8] sm:$0xff] }
  0xae   :  { %v89_v46 = vsel %vm88_vm2, %v87_v44, %v83_v43  ;;  %v499_v43 = vld [vmem:[#allocation3 + $0x110] sm:$0xff]  ;;  %v502_v44 = vld [vmem:[#allocation3 + $0x128] sm:$0xff] }
  0xaf   :  { %v91_v47 = vadd.f32 %v89_v46, %v58_v45  ;;  %v504_v45 = vld [vmem:[#allocation3 + $0x138] sm:$0xff]  ;;  %v1385_v46 = vpack.c.bf16 %v499_v43, %v497_v42  ;;  %v115_v43 = vsub.s32 2, %v1854_v39 }
  0xb1   :  { %93 = vst.msk [vmem:[#allocation2] sm:$0x3] %vm54_vm1, %v91_v47  ;;  %v1387_v47 = vpack.c.bf16 %v504_v45, %v502_v44  ;;  %v119_v45 = vsub.s32 3, %v1854_v39 }
  0xb8   :  { %v97_v49 = vld [vmem:[#allocation2] sm:$0x3] }
  0xb9   :  { %v98_v50 = vmul.f32 0.00390625, %v97_v49  ;;  %v503_v49 = vld [vmem:[#allocation3 + $0x130] sm:$0xff] }
  0xbb   :  { %1268 = vmatmul.mubr.msk.f32.vlgmr.msra.gmra.mrb[0].mxu1 %vm153_vm3, %v98_v50 }
  0xbc   :  { %1270 = vmatpush1.msk.msra.mxu1 %vm65_vm0, %v1848_v13  ;;  %308 = vmatprep.mubr.f32.mxu1 %v1758_v10  ;;  %v472_v13 = vld [vmem:[#allocation3 + $0x38] sm:$0xff] }
  0xbd   :  { %1272 = vmatprep.subr.msk.mxu1 %vm65_vm0, %v151_v51  ;;  %v1355_v61 = vpack.c.bf16 %v472_v13, %v470_v59  ;;  %v508_v51 = vld [vmem:[#allocation3 + $0x158] sm:$0xff]  ;;  %v509_v13 = vld [vmem:[#allocation3 + $0x160] sm:$0xff] }
  0xbf   :  { %1271 = vmatmul.mubr.msk.f32.vlgmr.msra.gmra.mrb[2].mxu1 %vm153_vm3, %v98_v50 }
  0xc0   :  { %1273 = vmatpush1.msk.msra.mxu1 %vm65_vm0, %v101_v48  ;;  %379 = vmatprep.mubr.f32.mxu1 %v1758_v10  ;;  %v501_v48 = vld [vmem:[#allocation3 + $0x120] sm:$0xff] }
  0xc1   :  { %1275 = vmatprep.subr.msk.mxu1 %vm65_vm0, %v152_v53 }
  0xc3   :  { %1274 = vmatmul.mubr.msk.f32.vlgmr.msra.gmra.mrb[4].mxu1 %vm153_vm3, %v98_v50 }
  0xc4   :  { %1276 = vmatpush1.msk.msra.mxu1 %vm65_vm0, %v102_v52  ;;  %450 = vmatprep.mubr.f32.mxu1 %v1758_v10  ;;  %v1363_v10 = vpack.c.bf16 %v480_v7, %v478_v6  ;;  %v1389_v52 = vpack.c.bf16 %v503_v49, %v501_v48  ;;  %v517_v7 = vld [vmem:[#allocation3 + $0x1a0] sm:$0xff] }
  0xc5   :  { %1352 = vmatprep.subr.bf16.mxu1 %v1351_v56  ;;  %v510_v56 = vld [vmem:[#allocation3 + $0x168] sm:$0xff] }
  0xc6   :  { %v1395_v59 = vpack.c.bf16 %v512_v57, %v510_v56 }
  0xc7   :  { %1277 = vmatmul.mubr.msk.f32.vlgmr.msra.gmra.mrb[6].mxu1 %vm153_vm3, %v98_v50  ;;  %v506_v50 = vld [vmem:[#allocation3 + $0x148] sm:$0xff] }
  0xc8   :  { %1354 = vmatpush1.bf16.msra.mxu1 %v1353_v60  ;;  %v1391_v53 = vpack.c.bf16 %v508_v51, %v506_v50  ;;  %v511_v60 = vld [vmem:[#allocation3 + $0x170] sm:$0xff]  ;;  %v127_v51 = vsub.s32 5, %v1854_v39 }
  0xc9   :  { %1356 = vmatprep.subr.bf16.mxu1 %v1355_v61  ;;  %v514_v61 = vld [vmem:[#allocation3 + $0x188] sm:$0xff]  ;;  %v1397_v63 = vpack.c.bf16 %v511_v60, %v509_v13 }
  0xca   :  { %v1399_v0 = vpack.c.bf16 %v516_v62, %v514_v61  ;;  %v598_v61 = vld [vmem:[#allocation3 + $0x428] sm:$0xff]  ;;  %v600_v62 = vld [vmem:[#allocation3 + $0x438] sm:$0xff] }
  0xcc   :  { %1358 = vmatpush1.bf16.msra.mxu1 %v1357_v2  ;;  %v515_v2 = vld [vmem:[#allocation3 + $0x190] sm:$0xff] }
  0xcd   :  { %1360 = vmatprep.subr.bf16.mxu1 %v1359_v3  ;;  %v518_v3 = vld [vmem:[#allocation3 + $0x1a8] sm:$0xff]  ;;  %v1401_v5 = vpack.c.bf16 %v515_v2, %v513_v1 }
  0xce   :  { %v1403_v6 = vpack.c.bf16 %v520_v4, %v518_v3  ;;  %v1483_v4 = vpack.c.bf16 %v600_v62, %v598_v61  ;;  %v629_v61 = vld [vmem:[#allocation3 + $0x520] sm:$0xff]  ;;  %v631_v62 = vld [vmem:[#allocation3 + $0x530] sm:$0xff] }
  0xd0   :  { %1362 = vmatpush1.bf16.msra.mxu1 %v1361_v8  ;;  %v519_v8 = vld [vmem:[#allocation3 + $0x1b0] sm:$0xff] }
  0xd1   :  { %1364 = vmatprep.subr.bf16.mxu1 %v1363_v10  ;;  %v522_v10 = vld [vmem:[#allocation3 + $0x1c8] sm:$0xff]  ;;  %v1405_v11 = vpack.c.bf16 %v519_v8, %v517_v7 }
  0xd2   :  { %v1407_v12 = vpack.c.bf16 %v524_v9, %v522_v10  ;;  %v602_v8 = vld [vmem:[#allocation3 + $0x448] sm:$0xff]  ;;  %v604_v10 = vld [vmem:[#allocation3 + $0x458] sm:$0xff] }
  0xd4   :  { %1366 = vmatpush1.bf16.msra.mxu1 %v1365_v15  ;;  %v523_v15 = vld [vmem:[#allocation3 + $0x1d0] sm:$0xff] }
  0xd5   :  { %1368 = vmatprep.subr.bf16.mxu1 %v1367_v16  ;;  %v1409_v16 = vpack.c.bf16 %v523_v15, %v521_v14  ;;  %v1487_v15 = vpack.c.bf16 %v604_v10, %v602_v8 }
  0xd8   :  { %1370 = vmatpush1.bf16.msra.mxu1 %v1369_v21  ;;  %v528_v21 = vld [vmem:[#allocation3 + $0x1f8] sm:$0xff] }
  0xd9   :  { %1372 = vmatprep.subr.bf16.mxu1 %v1371_v22  ;;  %v585_v22 = vld [vmem:[#allocation3 + $0x3c0] sm:$0xff]  ;;  %v1411_v23 = vpack.c.bf16 %v528_v21, %v526_v20  ;;  %v1491_v21 = vpack.c.bf16 %v608_v19, %v606_v18 }
  0xda   :  { %v641_v19 = vld [vmem:[#allocation3 + $0x580] sm:$0xff] }
  0xdc   :  { %1374 = vmatpush1.bf16.msra.mxu1 %v1373_v27  ;;  %v1473_v27 = vpack.c.bf16 %v587_v24, %v585_v22  ;;  %v605_v22 = vld [vmem:[#allocation3 + $0x460] sm:$0xff]  ;;  %v610_v24 = vld [vmem:[#allocation3 + $0x488] sm:$0xff] }
  0xdd   :  { %1376 = vmatprep.subr.bf16.mxu1 %v1375_v28  ;;  %v1413_v28 = vpack.c.bf16 %v527_v26, %v525_v25  ;;  %v612_v25 = vld [vmem:[#allocation3 + $0x498] sm:$0xff] }
  0xde   :  { %1474 = vmatpush1.bf16.msra.mxu0 %v1473_v27  ;;  %v1495_v27 = vpack.c.bf16 %v612_v25, %v610_v24  ;;  %v645_v25 = vld [vmem:[#allocation3 + $0x5a0] sm:$0xff] }
  0xdf   :  { %1476 = vmatprep.subr.bf16.mxu0 %v1475_v31  ;;  %v616_v31 = vld [vmem:[#allocation3 + $0x4b8] sm:$0xff] }
  0xe0   :  { %1378 = vmatpush1.bf16.msra.mxu1 %v1377_v33  ;;  %v591_v33 = vld [vmem:[#allocation3 + $0x3f0] sm:$0xff] }
  0xe1   :  { %1380 = vmatprep.subr.bf16.mxu1 %v1379_v34  ;;  %v1477_v34 = vpack.c.bf16 %v591_v33, %v589_v32  ;;  %v1499_v33 = vpack.c.bf16 %v616_v31, %v614_v30  ;;  %v123_v30 = vsub.s32 4, %v1854_v39 }
  0xe3   :  { %1478 = vmatpush1.bf16.msra.mxu0 %v1477_v34  ;;  %v613_v34 = vld [vmem:[#allocation3 + $0x4a0] sm:$0xff] }
  0xe4   :  { %1382 = vmatpush1.bf16.msra.mxu1 %v1381_v40  ;;  %1480 = vmatprep.subr.bf16.mxu0 %v1479_v37  ;;  %v1881_v40 = vld [vmem:[%s2142_s2] sm:$0xff] }
  0xe5   :  { %1384 = vmatprep.subr.bf16.mxu1 %v1383_v41  ;;  %v111_v41 = vsub.s32 1, %v1854_v39  ;;  %v108_v42 = vrot.slane %v1881_v40, %v107_v38  ;;  %v116_v49 = vrot.slane %v1881_v40, %v115_v43  ;;  %v128_v13 = vrot.slane %v1881_v40, %v127_v51  ;;  %v620_v37 = vld [vmem:[#allocation3 + $0x4d8] sm:$0xff]  ;;  %v623_v51 = vld [vmem:[#allocation3 + $0x4f0] sm:$0xff] }
  0xe6   :  { %v1503_v43 = vpack.c.bf16 %v620_v37, %v618_v36  ;;  %v656_v36 = vld [vmem:[#allocation3 + $0x5f8] sm:$0xff] }
  0xe7   :  { %v112_v44 = vrot.slane %v1881_v40, %v111_v41 }
  0xe8   :  { %1386 = vmatpush1.bf16.msra.mxu1 %v1385_v46 }
  0xe9   :  { %1388 = vmatprep.subr.bf16.mxu1 %v1387_v47 }
  0xec   :  { %1390 = vmatpush1.bf16.msra.mxu1 %v1389_v52  ;;  %v120_v52 = vrot.slane %v1881_v40, %v119_v45  ;;  %v619_v45 = vld [vmem:[#allocation3 + $0x4d0] sm:$0xff] }
  0xed   :  { %1392 = vmatprep.subr.bf16.mxu1 %v1391_v53 }
  0xf0   :  { %1394 = vmatpush1.bf16.msra.mxu1 %v1393_v58  ;;  %v593_v58 = vld [vmem:[#allocation3 + $0x400] sm:$0xff] }
  0xf1   :  { %1396 = vmatprep.subr.bf16.mxu1 %v1395_v59  ;;  %v595_v59 = vld [vmem:[#allocation3 + $0x410] sm:$0xff] }
  0xf2   :  { %v1481_v1 = vpack.c.bf16 %v595_v59, %v593_v58  ;;  %v630_v58 = vld [vmem:[#allocation3 + $0x528] sm:$0xff]  ;;  %v632_v59 = vld [vmem:[#allocation3 + $0x538] sm:$0xff] }
  0xf4   :  { %1398 = vmatpush1.bf16.msra.mxu1 %v1397_v63 }
  0xf5   :  { %1400 = vmatprep.subr.bf16.mxu1 %v1399_v0 }
  0xf8   :  { %1402 = vmatpush1.bf16.msra.mxu1 %v1401_v5  ;;  %v597_v5 = vld [vmem:[#allocation3 + $0x420] sm:$0xff] }
  0xf9   :  { %1404 = vmatprep.subr.bf16.mxu1 %v1403_v6  ;;  %v599_v6 = vld [vmem:[#allocation3 + $0x430] sm:$0xff] }
  0xfc   :  { %1406 = vmatpush1.bf16.msra.mxu1 %v1405_v11 }
  0xfd   :  { %1408 = vmatprep.subr.bf16.mxu1 %v1407_v12  ;;  %v1485_v12 = vpack.c.bf16 %v599_v6, %v597_v5  ;;  %v635_v5 = vld [vmem:[#allocation3 + $0x550] sm:$0xff]  ;;  %v638_v6 = vld [vmem:[#allocation3 + $0x568] sm:$0xff] }
 0x100   :  { %1410 = vmatpush1.bf16.msra.mxu1 %v1409_v16  ;;  %v601_v16 = vld [vmem:[#allocation3 + $0x440] sm:$0xff] }
 0x101   :  { %1412 = vmatprep.subr.bf16.mxu1 %v1411_v23  ;;  %v1489_v20 = vpack.c.bf16 %v603_v17, %v601_v16  ;;  %v607_v23 = vld [vmem:[#allocation3 + $0x470] sm:$0xff]  ;;  %v644_v16 = vld [vmem:[#allocation3 + $0x598] sm:$0xff] }
 0x102   :  { %v1493_v26 = vpack.c.bf16 %v607_v23, %v605_v22  ;;  %v648_v22 = vld [vmem:[#allocation3 + $0x5b8] sm:$0xff] }
 0x104   :  { %1414 = vmatpush1.bf16.msra.mxu1 %v1413_v28  ;;  %v609_v28 = vld [vmem:[#allocation3 + $0x480] sm:$0xff] }
 0x105   :  { %v1497_v32 = vpack.c.bf16 %v611_v29, %v609_v28  ;;  %v652_v28 = vld [vmem:[#allocation3 + $0x5d8] sm:$0xff] }
 0x18e   :  { %v239_v46 = vpop.f32.mrb[0].mxu1 }
 0x18f   :  { %v240_v47 = vadd.f32 %v239_v46, %v108_v42  ;;  %v241_v48 = vpop.f32.mrb[1].mxu1  ;;  %v1501_v42 = vpack.c.bf16 %v615_v35, %v613_v34  ;;  %v622_v46 = vld [vmem:[#allocation3 + $0x4e8] sm:$0xff]  ;;  %v135_v34 = vsub.s32 7, %v1854_v39 }
 0x190   :  { %v242_v50 = vadd.f32 %v241_v48, %v112_v44  ;;  %v617_v44 = vld [vmem:[#allocation3 + $0x4c0] sm:$0xff]  ;;  %v654_v35 = vld [vmem:[#allocation3 + $0x5e8] sm:$0xff] }
 0x191   :  { %v457_v55 = vmax.f32 %v240_v47, 0.0  ;;  %v624_v47 = vld [vmem:[#allocation3 + $0x4f8] sm:$0xff]  ;;  %v1505_v48 = vpack.c.bf16 %v619_v45, %v617_v44  ;;  %v653_v44 = vld [vmem:[#allocation3 + $0x5e0] sm:$0xff]  ;;  %v655_v45 = vld [vmem:[#allocation3 + $0x5f0] sm:$0xff] }
 0x192   :  { %v458_v53 = vmax.f32 %v242_v50, 0.0  ;;  %v310_v54 = vpop.f32.mrb[2].mxu1  ;;  %v621_v50 = vld [vmem:[#allocation3 + $0x4e0] sm:$0xff] }
 0x193   :  { %v311_v56 = vadd.f32 %v310_v54, %v116_v49  ;;  %v312_v57 = vpop.f32.mrb[3].mxu1  ;;  %v1507_v49 = vpack.c.bf16 %v624_v47, %v622_v46  ;;  %v1509_v54 = vpack.c.bf16 %v623_v51, %v621_v50  ;;  %v136_v46 = vrot.slane %v1881_v40, %v135_v34  ;;  %v658_v47 = vld [vmem:[#allocation3 + $0x608] sm:$0xff] }
 0x194   :  { %795 = vmatprep.mubr.f32.mxu1 %v458_v53  ;;  %v313_v60 = vadd.f32 %v312_v57, %v120_v52  ;;  %v626_v52 = vld [vmem:[#allocation3 + $0x508] sm:$0xff]  ;;  %v628_v53 = vld [vmem:[#allocation3 + $0x518] sm:$0xff]  ;;  %v627_v57 = vld [vmem:[#allocation3 + $0x510] sm:$0xff] }
 0x195   :  { %796 = vmatmul.mubr.f32.vlgmr.msra.gmra.mrb[8].mxu1 %v457_v55  ;;  %v459_v2 = vmax.f32 %v311_v56, 0.0  ;;  %v1511_v55 = vpack.c.bf16 %v628_v53, %v626_v52  ;;  %v625_v56 = vld [vmem:[#allocation3 + $0x500] sm:$0xff]  ;;  %v659_v53 = vld [vmem:[#allocation3 + $0x610] sm:$0xff] }
 0x196   :  { %v1896_v63 = vpop.f32.mrb[4].mxu1  ;;  %v460_v0 = vmax.f32 %v313_v60, 0.0  ;;  %v1515_v60 = vpack.c.bf16 %v632_v59, %v630_v58  ;;  %v657_v52 = vld [vmem:[#allocation3 + $0x600] sm:$0xff] }
 0x197   :  { %v383_v3 = vpop.f32.mrb[5].mxu1 }
 0x198   :  { %v384_v7 = vadd.f32 %v383_v3, %v128_v13  ;;  %866 = vmatprep.mubr.f32.mxu0 %v460_v0  ;;  %v1513_v13 = vpack.c.bf16 %v627_v57, %v625_v56  ;;  %v634_v0 = vld [vmem:[#allocation3 + $0x548] sm:$0xff]  ;;  %v664_v56 = vld [vmem:[#allocation3 + $0x638] sm:$0xff]  ;;  %v1545_v57 = vpack.c.bf16 %v659_v53, %v657_v52 }
 0x199   :  { %867 = vmatmul.mubr.f32.vlgmr.msra.gmra.mrb[0].mxu0 %v459_v2  ;;  %v1517_v2 = vpack.c.bf16 %v631_v62, %v629_v61  ;;  %v666_v62 = vld [vmem:[#allocation3 + $0x648] sm:$0xff] }
 0x19a   :  { %v462_v9 = vmax.f32 %v384_v7, 0.0  ;;  %1482 = vmatpush1.bf16.msra.mxu0 %v1481_v1  ;;  %v1898_v11 = vpop.f32.mrb[6].mxu1  ;;  %v636_v1 = vld [vmem:[#allocation3 + $0x558] sm:$0xff] }
 0x19b   :  { %v1900_v14 = vpop.f32.mrb[7].mxu1  ;;  %1484 = vmatprep.subr.bf16.mxu0 %v1483_v4  ;;  %v1519_v3 = vpack.c.bf16 %v636_v1, %v634_v0  ;;  %v633_v4 = vld [vmem:[#allocation3 + $0x540] sm:$0xff]  ;;  %v640_v7 = vld [vmem:[#allocation3 + $0x578] sm:$0xff] }
 0x19c   :  { %937 = vmatprep.mubr.f32.mxu0 %v462_v9  ;;  %v1521_v8 = vpack.c.bf16 %v635_v5, %v633_v4  ;;  %v1523_v10 = vpack.c.bf16 %v640_v7, %v638_v6  ;;  %v637_v9 = vld [vmem:[#allocation3 + $0x560] sm:$0xff]  ;;  %v668_v0 = vld [vmem:[#allocation3 + $0x658] sm:$0xff] }
 0x19d   :  { %v1551_v1 = vpack.c.bf16 %v668_v0, %v666_v62  ;;  %v672_v4 = vld [vmem:[#allocation3 + $0x678] sm:$0xff]  ;;  %v669_v7 = vld [vmem:[#allocation3 + $0x660] sm:$0xff]  ;;  %v691_v62 = vld [vmem:[#allocation3 + $0x710] sm:$0xff] }
 0x19e   :  { %1486 = vmatpush1.bf16.msra.mxu0 %v1485_v12  ;;  %v639_v12 = vld [vmem:[#allocation3 + $0x570] sm:$0xff] }
 0x19f   :  { %1488 = vmatprep.subr.bf16.mxu0 %v1487_v15  ;;  %v642_v15 = vld [vmem:[#allocation3 + $0x588] sm:$0xff]  ;;  %v1525_v17 = vpack.c.bf16 %v639_v12, %v637_v9  ;;  %v676_v9 = vld [vmem:[#allocation3 + $0x698] sm:$0xff] }
 0x1a0   :  { %v1527_v18 = vpack.c.bf16 %v644_v16, %v642_v15  ;;  %v673_v16 = vld [vmem:[#allocation3 + $0x680] sm:$0xff] }
 0x1a2   :  { %1490 = vmatpush1.bf16.msra.mxu0 %v1489_v20  ;;  %v643_v20 = vld [vmem:[#allocation3 + $0x590] sm:$0xff] }
 0x1a3   :  { %1492 = vmatprep.subr.bf16.mxu0 %v1491_v21  ;;  %v646_v21 = vld [vmem:[#allocation3 + $0x5a8] sm:$0xff]  ;;  %v1529_v23 = vpack.c.bf16 %v643_v20, %v641_v19  ;;  %v680_v19 = vld [vmem:[#allocation3 + $0x6b8] sm:$0xff] }
 0x1a4   :  { %v1531_v24 = vpack.c.bf16 %v648_v22, %v646_v21  ;;  %v677_v22 = vld [vmem:[#allocation3 + $0x6a0] sm:$0xff] }
 0x1a6   :  { %1494 = vmatpush1.bf16.msra.mxu0 %v1493_v26  ;;  %v647_v26 = vld [vmem:[#allocation3 + $0x5b0] sm:$0xff] }
 0x1a7   :  { %1496 = vmatprep.subr.bf16.mxu0 %v1495_v27  ;;  %v650_v27 = vld [vmem:[#allocation3 + $0x5c8] sm:$0xff]  ;;  %v1533_v29 = vpack.c.bf16 %v647_v26, %v645_v25  ;;  %v684_v25 = vld [vmem:[#allocation3 + $0x6d8] sm:$0xff]  ;;  %v681_v26 = vld [vmem:[#allocation3 + $0x6c0] sm:$0xff] }
 0x1a8   :  { %v1535_v31 = vpack.c.bf16 %v652_v28, %v650_v27  ;;  %v683_v27 = vld [vmem:[#allocation3 + $0x6d0] sm:$0xff] }
 0x1aa   :  { %1498 = vmatpush1.bf16.msra.mxu0 %v1497_v32  ;;  %v649_v32 = vld [vmem:[#allocation3 + $0x5c0] sm:$0xff] }
 0x1ab   :  { %1500 = vmatprep.subr.bf16.mxu0 %v1499_v33  ;;  %v651_v33 = vld [vmem:[#allocation3 + $0x5d0] sm:$0xff] }
 0x1ac   :  { %v1537_v37 = vpack.c.bf16 %v651_v33, %v649_v32  ;;  %v1032_v32 = vld [vmem:[%s2145_s5 + $0x88] sm:$0xff]  ;;  %v1015_v33 = vld [vmem:[%s2145_s5] sm:$0xff] }
 0x1ae   :  { %1502 = vmatpush1.bf16.msra.mxu0 %v1501_v42  ;;  %v124_v42 = vrot.slane %v1881_v40, %v123_v30  ;;  %v688_v30 = vld [vmem:[#allocation3 + $0x6f8] sm:$0xff] }
 0x1af   :  { %1504 = vmatprep.subr.bf16.mxu0 %v1503_v43  ;;  %v1539_v43 = vpack.c.bf16 %v656_v36, %v654_v35  ;;  %v1016_v36 = vld [vmem:[%s2145_s5 + $0x8] sm:$0xff] }
 0x1b0   :  { %v382_v50 = vadd.f32 %v1896_v63, %v124_v42  ;;  %v1034_v42 = vld [vmem:[%s2145_s5 + $0x98] sm:$0xff] }
 0x1b2   :  { %1506 = vmatpush1.bf16.msra.mxu0 %v1505_v48  ;;  %v660_v48 = vld [vmem:[#allocation3 + $0x618] sm:$0xff]  ;;  %v461_v58 = vmax.f32 %v382_v50, 0.0  ;;  %v685_v50 = vld [vmem:[#allocation3 + $0x6e0] sm:$0xff] }
 0x1b3   :  { %1508 = vmatprep.subr.bf16.mxu0 %v1507_v49  ;;  %v1541_v49 = vpack.c.bf16 %v655_v45, %v653_v44  ;;  %v1543_v51 = vpack.c.bf16 %v660_v48, %v658_v47  ;;  %v1017_v45 = vld [vmem:[%s2145_s5 + $0x10] sm:$0xff]  ;;  %v1035_v47 = vld [vmem:[%s2145_s5 + $0xa0] sm:$0xff]  ;;  %v1036_v48 = vld [vmem:[%s2145_s5 + $0xa8] sm:$0xff] }
 0x1b6   :  { %1510 = vmatpush1.bf16.msra.mxu0 %v1509_v54  ;;  %v455_v54 = vadd.f32 %v1900_v14, %v136_v46  ;;  %v665_v14 = vld [vmem:[#allocation3 + $0x640] sm:$0xff]  ;;  %v1018_v46 = vld [vmem:[%s2145_s5 + $0x18] sm:$0xff] }
 0x1b7   :  { %1512 = vmatprep.subr.bf16.mxu0 %v1511_v55  ;;  %v662_v55 = vld [vmem:[#allocation3 + $0x628] sm:$0xff]  ;;  %v1605_v52 = vpack.c.bf16 %v1018_v46, %v1017_v45 }
 0x1b8   :  { %v1547_v59 = vpack.c.bf16 %v664_v56, %v662_v55  ;;  %v464_v61 = vmax.f32 %v455_v54, 0.0  ;;  %v690_v54 = vld [vmem:[#allocation3 + $0x708] sm:$0xff]  ;;  %v1607_v55 = vpack.c.bf16 %v1036_v48, %v1035_v47  ;;  %v1019_v56 = vld [vmem:[%s2145_s5 + $0x20] sm:$0xff] }
 0x1b9   :  { %v1028_v45 = vld [vmem:[%s2145_s5 + $0x68] sm:$0xff]  ;;  %v708_v47 = vld [vmem:[#allocation3 + $0x798] sm:$0xff] }
 0x1ba   :  { %1514 = vmatpush1.bf16.msra.mxu0 %v1513_v13  ;;  %v661_v13 = vld [vmem:[#allocation3 + $0x620] sm:$0xff]  ;;  %v706_v46 = vld [vmem:[#allocation3 + $0x788] sm:$0xff] }
 0x1bb   :  { %1516 = vmatprep.subr.bf16.mxu0 %v1515_v60  ;;  %v663_v60 = vld [vmem:[#allocation3 + $0x630] sm:$0xff] }
 0x1bc   :  { %v1549_v63 = vpack.c.bf16 %v663_v60, %v661_v13  ;;  %v1038_v13 = vld [vmem:[%s2145_s5 + $0xb8] sm:$0xff] }
 0x1be   :  { %1518 = vmatpush1.bf16.msra.mxu0 %v1517_v2  ;;  %v667_v2 = vld [vmem:[#allocation3 + $0x650] sm:$0xff] }
 0x1bf   :  { %1520 = vmatprep.subr.bf16.mxu0 %v1519_v3  ;;  %v670_v3 = vld [vmem:[#allocation3 + $0x668] sm:$0xff]  ;;  %v1553_v5 = vpack.c.bf16 %v667_v2, %v665_v14 }
 0x1c0   :  { %v1555_v6 = vpack.c.bf16 %v672_v4, %v670_v3  ;;  %v1021_v2 = vld [vmem:[%s2145_s5 + $0x30] sm:$0xff]  ;;  %v1022_v3 = vld [vmem:[%s2145_s5 + $0x38] sm:$0xff] }
 0x1c1   :  { %v696_v4 = vld [vmem:[#allocation3 + $0x738] sm:$0xff] }
 0x1c2   :  { %1522 = vmatpush1.bf16.msra.mxu0 %v1521_v8  ;;  %v671_v8 = vld [vmem:[#allocation3 + $0x670] sm:$0xff] }
 0x1c3   :  { %1524 = vmatprep.subr.bf16.mxu0 %v1523_v10  ;;  %v674_v10 = vld [vmem:[#allocation3 + $0x688] sm:$0xff]  ;;  %v1557_v12 = vpack.c.bf16 %v671_v8, %v669_v7  ;;  %v693_v8 = vld [vmem:[#allocation3 + $0x720] sm:$0xff] }
 0x1c4   :  { %v1559_v15 = vpack.c.bf16 %v676_v9, %v674_v10  ;;  %v695_v10 = vld [vmem:[#allocation3 + $0x730] sm:$0xff]  ;;  %v1613_v9 = vpack.c.bf16 %v1022_v3, %v1021_v2 }
 0x1c5   :  { %v1029_v2 = vld [vmem:[%s2145_s5 + $0x70] sm:$0xff] }
 0x1c6   :  { %1526 = vmatpush1.bf16.msra.mxu0 %v1525_v17  ;;  %v675_v17 = vld [vmem:[#allocation3 + $0x690] sm:$0xff] }
 0x1c7   :  { %1528 = vmatprep.subr.bf16.mxu0 %v1527_v18  ;;  %v678_v18 = vld [vmem:[#allocation3 + $0x6a8] sm:$0xff]  ;;  %v1561_v20 = vpack.c.bf16 %v675_v17, %v673_v16  ;;  %v1023_v17 = vld [vmem:[%s2145_s5 + $0x40] sm:$0xff] }
 0x1c8   :  { %v1563_v21 = vpack.c.bf16 %v680_v19, %v678_v18  ;;  %v1024_v18 = vld [vmem:[%s2145_s5 + $0x48] sm:$0xff]  ;;  %v700_v19 = vld [vmem:[#allocation3 + $0x758] sm:$0xff] }
 0x1ca   :  { %1530 = vmatpush1.bf16.msra.mxu0 %v1529_v23  ;;  %v679_v23 = vld [vmem:[#allocation3 + $0x6b0] sm:$0xff] }
 0x1cb   :  { %1532 = vmatprep.subr.bf16.mxu0 %v1531_v24  ;;  %v682_v24 = vld [vmem:[#allocation3 + $0x6c8] sm:$0xff]  ;;  %v1565_v28 = vpack.c.bf16 %v679_v23, %v677_v22  ;;  %v1581_v22 = vpack.c.bf16 %v695_v10, %v693_v8  ;;  %v697_v23 = vld [vmem:[#allocation3 + $0x740] sm:$0xff]  ;;  %v715_v10 = vld [vmem:[%s2144_s4] sm:$0x3] }
 0x1cc   :  { %v1567_v34 = vpack.c.bf16 %v684_v25, %v682_v24  ;;  %v699_v24 = vld [vmem:[#allocation3 + $0x750] sm:$0xff]  ;;  %v1617_v25 = vpack.c.bf16 %v1024_v18, %v1023_v17  ;;  %v1127_v17 = vld [vmem:[%s2147_s7 + $0x8] sm:$0xff] }
 0x1ce   :  { %1534 = vmatpush1.bf16.msra.mxu0 %v1533_v29  ;;  %v686_v29 = vld [vmem:[#allocation3 + $0x6e8] sm:$0xff] }
 0x1cf   :  { %1536 = vmatprep.subr.bf16.mxu0 %v1535_v31  ;;  %v1031_v31 = vld [vmem:[%s2145_s5 + $0x80] sm:$0xff]  ;;  %v1571_v53 = vpack.c.bf16 %v688_v30, %v686_v29  ;;  %v1025_v29 = vld [vmem:[%s2145_s5 + $0x50] sm:$0xff]  ;;  %v1026_v30 = vld [vmem:[%s2145_s5 + $0x58] sm:$0xff] }
 0x1d0   :  { %v1599_v35 = vpack.c.bf16 %v1032_v32, %v1031_v31  ;;  %v704_v31 = vld [vmem:[#allocation3 + $0x778] sm:$0xff] }
 0x1d1   :  { %v1043_v32 = vld [vmem:[%s2145_s5 + $0xe0] sm:$0xff] }
 0x1d2   :  { %1538 = vmatpush1.bf16.msra.mxu0 %v1537_v37  ;;  %v1033_v37 = vld [vmem:[%s2145_s5 + $0x90] sm:$0xff]  ;;  %1600 = vmatprep.subr.bf16.mxu1 %v1599_v35  ;;  %v701_v35 = vld [vmem:[#allocation3 + $0x760] sm:$0xff] }
 0x1d3   :  { %1540 = vmatprep.subr.bf16.mxu0 %v1539_v43  ;;  %v1601_v43 = vpack.c.bf16 %v1016_v36, %v1015_v33  ;;  %v1603_v44 = vpack.c.bf16 %v1034_v42, %v1033_v37  ;;  %v1044_v33 = vld [vmem:[%s2145_s5 + $0xe8] sm:$0xff]  ;;  %v1621_v36 = vpack.c.bf16 %v1026_v30, %v1025_v29  ;;  %v703_v42 = vld [vmem:[#allocation3 + $0x770] sm:$0xff]  ;;  %v1130_v30 = vld [vmem:[%s2147_s7 + $0x20] sm:$0xff] }
 0x1d4   :  { %v1589_v48 = vpack.c.bf16 %v703_v42, %v701_v35  ;;  %v1150_v42 = vld [vmem:[%s2147_s7 + $0xc0] sm:$0xff] }
 0x1d5   :  { %1602 = vmatpush3.bf16.msra.mxu1 %v1601_v43  ;;  %v1623_v43 = vpack.c.bf16 %v1044_v33, %v1043_v32  ;;  %v1148_v32 = vld [vmem:[%s2147_s7 + $0xb0] sm:$0xff]  ;;  %v1149_v33 = vld [vmem:[%s2147_s7 + $0xb8] sm:$0xff] }
 0x1d6   :  { %1542 = vmatpush1.bf16.msra.mxu0 %v1541_v49  ;;  %v1569_v49 = vpack.c.bf16 %v683_v27, %v681_v26  ;;  %1604 = vmatprep.subr.bf16.mxu1 %v1603_v44  ;;  %v702_v27 = vld [vmem:[#allocation3 + $0x768] sm:$0xff]  ;;  %v1027_v44 = vld [vmem:[%s2145_s5 + $0x60] sm:$0xff]  ;;  %v1643_v35 = vpack.c.bf16 %v1149_v33, %v1148_v32 }
 0x1d7   :  { %1544 = vmatprep.subr.bf16.mxu0 %v1543_v51  ;;  %v687_v51 = vld [vmem:[#allocation3 + $0x6f0] sm:$0xff]  ;;  %v1587_v37 = vpack.c.bf16 %v704_v31, %v702_v27  ;;  %v1147_v27 = vld [vmem:[%s2147_s7 + $0xa8] sm:$0xff] }
 0x1d8   :  { %v1573_v60 = vpack.c.bf16 %v687_v51, %v685_v50  ;;  %v1591_v50 = vpack.c.bf16 %v708_v47, %v706_v46  ;;  %v705_v51 = vld [vmem:[#allocation3 + $0x780] sm:$0xff] }
 0x1d9   :  { %938 = vmatmul.mubr.f32.vlgmr.msra.gmra.mrb[0].mxu0 %v461_v58  ;;  %v692_v58 = vld [vmem:[#allocation3 + $0x718] sm:$0xff]  ;;  %1606 = vmatpush3.bf16.msra.mxu1 %v1605_v52  ;;  %v707_v52 = vld [vmem:[#allocation3 + $0x790] sm:$0xff]  ;;  %v1131_v31 = vld [vmem:[%s2147_s7 + $0x28] sm:$0xff] }
 0x1da   :  { %1546 = vmatpush1.bf16.msra.mxu0 %v1545_v57  ;;  %1278 = vmatprep.mubr.msk.f32.mxu0 %vm727_vm4, %v464_v61  ;;  %v1020_v57 = vld [vmem:[%s2145_s5 + $0x28] sm:$0xff]  ;;  %v1134_v46 = vld [vmem:[%s2147_s7 + $0x40] sm:$0xff] }
 0x1db   :  { %1548 = vmatprep.subr.bf16.mxu0 %v1547_v59  ;;  %v1037_v59 = vld [vmem:[%s2145_s5 + $0xb0] sm:$0xff]  ;;  %v689_v61 = vld [vmem:[#allocation3 + $0x700] sm:$0xff]  ;;  %v1609_v0 = vpack.c.bf16 %v1020_v57, %v1019_v56  ;;  %1608 = vmatprep.subr.bf16.mxu1 %v1607_v55  ;;  %v131_v55 = vsub.s32 6, %v1854_v39  ;;  %v1593_v56 = vpack.c.bf16 %v707_v52, %v705_v51  ;;  %v1145_v39 = vld [vmem:[%s2147_s7 + $0x98] sm:$0xff] }
 0x1dc   :  { %v1611_v14 = vpack.c.bf16 %v1038_v13, %v1037_v59  ;;  %v1577_v7 = vpack.c.bf16 %v691_v62, %v689_v61  ;;  %v711_v59 = vld [vmem:[#allocation3 + $0x7b0] sm:$0xff]  ;;  %v714_v61 = vld [vmem:[#allocation3 + $0x7c8] sm:$0xff] }
 0x1dd   :  { %1610 = vmatpush3.bf16.msra.mxu1 %v1609_v0  ;;  %v132_v13 = vrot.slane %v1881_v40, %v131_v55  ;;  %v713_v0 = vld [vmem:[#allocation3 + $0x7c0] sm:$0xff]  ;;  %v1046_v40 = vld [vmem:[%s2145_s5 + $0xf8] sm:$0xff]  ;;  %v1136_v52 = vld [vmem:[%s2147_s7 + $0x50] sm:$0xff] }
 0x1de   :  { %1550 = vmatpush1.bf16.msra.mxu0 %v1549_v63  ;;  %v1575_v63 = vpack.c.bf16 %v692_v58, %v690_v54  ;;  %1612 = vmatprep.subr.bf16.mxu1 %v1611_v14  ;;  %v712_v54 = vld [vmem:[#allocation3 + $0x7b8] sm:$0xff]  ;;  %v709_v58 = vld [vmem:[#allocation3 + $0x7a0] sm:$0xff] }
 0x1df   :  { %1552 = vmatprep.subr.bf16.mxu0 %v1551_v1  ;;  %v694_v1 = vld [vmem:[#allocation3 + $0x728] sm:$0xff]  ;;  %v453_v62 = vadd.f32 %v1898_v11, %v132_v13  ;;  %v1030_v11 = vld [vmem:[%s2145_s5 + $0x78] sm:$0xff] }
 0x1e0   :  { %v1629_v3 = vpack.c.bf16 %v1030_v11, %v1029_v2  ;;  %v1135_v47 = vld [vmem:[%s2147_s7 + $0x48] sm:$0xff]  ;;  %v1156_v13 = vld [vmem:[%s2147_s7 + $0xf0] sm:$0xff] }
 0x1e1   :  { %1614 = vmatpush3.bf16.msra.mxu1 %v1613_v9  ;;  %v720_v9 = vrot.slane %v715_v10, %v107_v38  ;;  %v1155_v55 = vld [vmem:[%s2147_s7 + $0xe8] sm:$0xff] }
 0x1e2   :  { %1554 = vmatpush1.bf16.msra.mxu0 %v1553_v5  ;;  %v1039_v5 = vld [vmem:[%s2145_s5 + $0xc0] sm:$0xff] }
 0x1e3   :  { %1556 = vmatprep.subr.bf16.mxu0 %v1555_v6  ;;  %v1040_v6 = vld [vmem:[%s2145_s5 + $0xc8] sm:$0xff] }
 0x1e4   :  { %v1615_v16 = vpack.c.bf16 %v1040_v6, %v1039_v5  ;;  %v1143_v5 = vld [vmem:[%s2147_s7 + $0x88] sm:$0xff] }
 0x1e6   :  { %1558 = vmatpush1.bf16.msra.mxu0 %v1557_v12  ;;  %v1579_v12 = vpack.c.bf16 %v696_v4, %v694_v1  ;;  %1616 = vmatprep.subr.bf16.mxu1 %v1615_v16  ;;  %v1045_v1 = vld [vmem:[%s2145_s5 + $0xf0] sm:$0xff]  ;;  %v1142_v4 = vld [vmem:[%s2147_s7 + $0x80] sm:$0xff] }
 0x1e7   :  { %1560 = vmatprep.subr.bf16.mxu0 %v1559_v15  ;;  %v698_v15 = vld [vmem:[#allocation3 + $0x748] sm:$0xff]  ;;  %1618 = vmatpush3.bf16.msra.mxu1 %v1617_v25  ;;  %v1627_v14 = vpack.c.bf16 %v1046_v40, %v1045_v1  ;;  %v1126_v16 = vld [vmem:[%s2147_s7] sm:$0xff]  ;;  %v1129_v25 = vld [vmem:[%s2147_s7 + $0x18] sm:$0xff] }
 0x1e8   :  { %v1583_v26 = vpack.c.bf16 %v700_v19, %v698_v15 }
 0x1ea   :  { %1562 = vmatpush1.bf16.msra.mxu0 %v1561_v20  ;;  %v1041_v20 = vld [vmem:[%s2145_s5 + $0xd0] sm:$0xff] }
 0x1eb   :  { %1564 = vmatprep.subr.bf16.mxu0 %v1563_v21  ;;  %v1042_v21 = vld [vmem:[%s2145_s5 + $0xd8] sm:$0xff] }
 0x1ee   :  { %1566 = vmatpush1.bf16.msra.mxu0 %v1565_v28  ;;  %v1619_v28 = vpack.c.bf16 %v1042_v21, %v1041_v20  ;;  %v1144_v20 = vld [vmem:[%s2147_s7 + $0x90] sm:$0xff] }
 0x1ef   :  { %1568 = vmatprep.subr.bf16.mxu0 %v1567_v34  ;;  %v1585_v34 = vpack.c.bf16 %v699_v24, %v697_v23  ;;  %v1635_v23 = vpack.c.bf16 %v1145_v39, %v1144_v20  ;;  %v1128_v24 = vld [vmem:[%s2147_s7 + $0x10] sm:$0xff] }
 0x1f0   :  { %1620 = vmatprep.subr.bf16.mxu1 %v1619_v28  ;;  %v1637_v28 = vpack.c.bf16 %v1129_v25, %v1128_v24 }
 0x1f1   :  { %1622 = vmatpush3.bf16.msra.mxu1 %v1621_v36  ;;  %v1132_v36 = vld [vmem:[%s2147_s7 + $0x30] sm:$0xff] }
 0x1f2   :  { %1570 = vmatpush1.bf16.msra.mxu0 %v1569_v49  ;;  %v1625_v49 = vpack.c.bf16 %v1028_v45, %v1027_v44  ;;  %1624 = vmatprep.subr.bf16.mxu1 %v1623_v43  ;;  %v1151_v43 = vld [vmem:[%s2147_s7 + $0xc8] sm:$0xff] }
 0x1f3   :  { %1572 = vmatprep.subr.bf16.mxu0 %v1571_v53  ;;  %v710_v53 = vld [vmem:[#allocation3 + $0x7a8] sm:$0xff]  ;;  %v1647_v45 = vpack.c.bf16 %v1151_v43, %v1150_v42 }
 0x1f4   :  { %v1595_v57 = vpack.c.bf16 %v712_v54, %v710_v53  ;;  %v1137_v53 = vld [vmem:[%s2147_s7 + $0x58] sm:$0xff]  ;;  %v1154_v54 = vld [vmem:[%s2147_s7 + $0xe0] sm:$0xff] }
 0x1f5   :  { %1626 = vmatpush3.bf16.msra.mxu1 %v1625_v49  ;;  %v1153_v49 = vld [vmem:[%s2147_s7 + $0xd8] sm:$0xff] }
 0x1f6   :  { %1574 = vmatpush1.bf16.msra.mxu0 %v1573_v60  ;;  %v1597_v60 = vpack.c.bf16 %v711_v59, %v709_v58  ;;  %1628 = vmatprep.subr.bf16.mxu1 %v1627_v14  ;;  %v1138_v58 = vld [vmem:[%s2147_s7 + $0x60] sm:$0xff]  ;;  %v1139_v59 = vld [vmem:[%s2147_s7 + $0x68] sm:$0xff] }
 0x1f7   :  { %1576 = vmatprep.subr.bf16.mxu0 %v1575_v63  ;;  %v463_v63 = vmax.f32 %v453_v62, 0.0  ;;  %v1279_v14 = vld [vmem:[%s2146_s6] ss:$0 sm:$0xff] }
 0x1f9   :  { %1630 = vmatpush3.bf16.msra.mxu1 %v1629_v3 }
 0x1fa   :  { %1578 = vmatpush1.bf16.msra.mxu0 %v1577_v7  ;;  %v1631_v7 = vpack.c.bf16 %v1143_v5, %v1142_v4 }
 0x1fb   :  { %1580 = vmatprep.subr.bf16.mxu0 %v1579_v12  ;;  %v724_v12 = vrot.slane %v715_v10, %v111_v41 }
 0x1fc   :  { %1632 = vmatprep.subr.bf16.mxu1 %v1631_v7 }
 0x1fe   :  { %1582 = vmatpush1.bf16.msra.mxu0 %v1581_v22  ;;  %v1633_v22 = vpack.c.bf16 %v1127_v17, %v1126_v16 }
 0x1ff   :  { %1584 = vmatprep.subr.bf16.mxu0 %v1583_v26  ;;  %v1146_v26 = vld [vmem:[%s2147_s7 + $0xa0] sm:$0xff] }
 0x200   :  { %v1639_v29 = vpack.c.bf16 %v1147_v27, %v1146_v26 }
 0x202   :  { %1586 = vmatpush1.bf16.msra.mxu0 %v1585_v34  ;;  %v1641_v34 = vpack.c.bf16 %v1131_v31, %v1130_v30 }
 0x203   :  { %1588 = vmatprep.subr.bf16.mxu0 %v1587_v37  ;;  %v1133_v37 = vld [vmem:[%s2147_s7 + $0x38] sm:$0xff] }
 0x204   :  { %v1645_v44 = vpack.c.bf16 %v1133_v37, %v1132_v36 }
 0x206   :  { %1590 = vmatpush1.bf16.msra.mxu0 %v1589_v48  ;;  %v1152_v48 = vld [vmem:[%s2147_s7 + $0xd0] sm:$0xff] }
 0x207   :  { %1592 = vmatprep.subr.bf16.mxu0 %v1591_v50  ;;  %v1649_v50 = vpack.c.bf16 %v1135_v47, %v1134_v46  ;;  %v1651_v51 = vpack.c.bf16 %v1153_v49, %v1152_v48 }
 0x20a   :  { %1594 = vmatpush1.bf16.msra.mxu0 %v1593_v56  ;;  %v1653_v56 = vpack.c.bf16 %v1137_v53, %v1136_v52 }
 0x20b   :  { %1596 = vmatprep.subr.bf16.mxu0 %v1595_v57  ;;  %v1655_v57 = vpack.c.bf16 %v1155_v55, %v1154_v54 }
 0x20e   :  { %1598 = vmatpush1.bf16.msra.mxu0 %v1597_v60  ;;  %v1157_v60 = vld [vmem:[%s2147_s7 + $0xf8] sm:$0xff] }
 0x20f   :  { %1000 = vmatprep.subr.mxu0 %v714_v61  ;;  %v1657_v61 = vpack.c.bf16 %v1139_v59, %v1138_v58  ;;  %v1659_v62 = vpack.c.bf16 %v1157_v60, %v1156_v13 }
 0x212   :  { %1001 = vmatpush1.msra.mxu0 %v713_v0  ;;  %v1140_v0 = vld [vmem:[%s2147_s7 + $0x70] sm:$0xff] }
 0x213   :  { %1009 = vmatmul.mubr.f32.vlgmr.msra.gmra.mrb[0].mxu0 %v463_v63  ;;  %v1141_v63 = vld [vmem:[%s2147_s7 + $0x78] sm:$0xff] }
 0x214   :  { %v1661_v1 = vpack.c.bf16 %v1141_v63, %v1140_v0 }
 0x268   :  { %v797_v6 = vpop.f32.mrb[8].mxu1 }
 0x269   :  { %v799_v8 = vpop.f32.mrb[9].mxu1  ;;  %v798_v15 = vadd.f32 %v797_v6, %v720_v9 }
 0x26a   :  { %v800_v18 = vadd.f32 %v799_v8, %v724_v12 }
 0x2e6   :  { %v1010_v19 = vpop.f32.mrb[0].mxu0 }
 0x2e7   :  { %v1664_v38 = vadd.f32 %v1010_v19, %v798_v15  ;;  %v1012_v41 = vpop.f32.mrb[1].mxu0 }
 0x2e8   :  { %v1666_v21 = vadd.f32 %v1012_v41, %v800_v18 }
 0x2ea   :  { %1118 = vmatprep.mubr.f32.mxu1 %v1666_v21 }
 0x2eb   :  { %1119 = vmatmul.mubr.f32.vlgmr.msra.gmra.mrb[10].mxu1 %v1664_v38 }
 0x2ec   :  { %1634 = vmatpush3.bf16.msra.mxu1 %v1633_v22  ;;  %1229 = vmatprep.mubr.f32.mxu1 %v1666_v21 }
 0x2ed   :  { %1636 = vmatprep.subr.bf16.mxu1 %v1635_v23 }
 0x2f0   :  { %1638 = vmatpush3.bf16.msra.mxu1 %v1637_v28 }
 0x2f1   :  { %1640 = vmatprep.subr.bf16.mxu1 %v1639_v29 }
 0x2f4   :  { %1642 = vmatpush3.bf16.msra.mxu1 %v1641_v34 }
 0x2f5   :  { %1644 = vmatprep.subr.bf16.mxu1 %v1643_v35 }
 0x2f8   :  { %1646 = vmatpush3.bf16.msra.mxu1 %v1645_v44 }
 0x2f9   :  { %1648 = vmatprep.subr.bf16.mxu1 %v1647_v45 }
 0x2fc   :  { %1650 = vmatpush3.bf16.msra.mxu1 %v1649_v50 }
 0x2fd   :  { %1652 = vmatprep.subr.bf16.mxu1 %v1651_v51 }
 0x300   :  { %1654 = vmatpush3.bf16.msra.mxu1 %v1653_v56 }
 0x301   :  { %1656 = vmatprep.subr.bf16.mxu1 %v1655_v57 }
 0x304   :  { %1658 = vmatpush3.bf16.msra.mxu1 %v1657_v61 }
 0x305   :  { %1660 = vmatprep.subr.bf16.mxu1 %v1659_v62 }
 0x308   :  { %1662 = vmatpush3.bf16.msra.mxu1 %v1661_v1 }
 0x30b   :  { %1230 = vmatmul.mubr.f32.vlgmr.msra.gmra.mrb[12].mxu1 %v1664_v38 }
 0x3be   :  { %v1313_v40 = vpop.f32.mrb[10].mxu1 }
 0x3bf   :  { %v1314_v2 = vpop.f32.mrb[11].mxu1 }
 0x3c0   :  { %v1315_v11 = vadd.f32 %v1314_v2, %v1313_v40 }
 0x3c2   :  { %v1121_v3 = vadd.f32 %v1315_v11, %v1279_v14 }
 0x3c4   :  { %1125 = vst.msk [vmem:[#allocation6] sm:$0x3] %vm1124_vm5, %v1121_v3 }
 0x3c5   :  { %1716 = shalt.err (!%p1713_p12)
}
 0x3c6   :  { %s1717_s27 = scalar_lea.hbm %s2149_s9, 32 }
 0x3c7   :  { %p1718_p13 = scmp.ne.s32.totalorder %s2149_s9, %s1717_s27  ;;  %p1721_p0 = scmp.lt.u32.totalorder %s1717_s27, %s2149_s9 }
 0x3c9   :  { %p1723_p1 = pnand %p1721_p0, %p1718_p13 }
 0x3cb   :  { %1726 = shalt.err (!%p1723_p1)
}
 0x3cc   :  { %1246 = dma.vmem_to_hbm [thread:$0]  %s1244_s24, 32, %s2149_s9, [#allocation5]   ;;  %v1280_v5 = vld [vmem:[%s2148_s8] ss:$0 sm:$0xff]  ;;  %vm1235_vm6 = vcmask 66560  }
 0x3cd   :  { %s1760_s13 = smov [#allocation7]  }
 0x3ce   :  { %s1253_s14 = sshll.u32 %s1760_s13, 4  ;;  %s1254_s14 = int_to_ptr.vmem [resolvable:$true] %s1253_s14 }
 0x3cf   :  { %s1727_s15 = scalar_lea.vmem %s1254_s14, 32  ;;  %p1732_p3 = scmp.lt.s32.totalorder %s1254_s14, %s1254_s14 }
 0x3d0   :  { %p1728_p2 = scmp.ne.s32.totalorder %s1254_s14, %s1727_s15  ;;  %p1733_p4 = scmp.lt.s32.totalorder %s1727_s15, %s1727_s15 }
 0x3d2   :  { %p1734_p5 = por %p1733_p4, %p1732_p3 }
 0x3d4   :  { %p1735_p6 = pnand %p1734_p5, %p1728_p2 }
 0x3de   :  { %v1348_v4 = vpop.f32.mrb[12].mxu1 }
 0x3df   :  { %v1349_v6 = vpop.f32.mrb[13].mxu1 }
 0x3e0   :  { %v1350_v7 = vadd.f32 %v1349_v6, %v1348_v4 }
 0x3e2   :  { %v1232_v8 = vadd.f32 %v1350_v7, %v1280_v5 }
 0x3e4   :  { %1236 = vst.msk [vmem:[#allocation7] sm:$0x3] %vm1235_vm6, %v1232_v8 }
 0x3e5   :  { %1738 = shalt.err (!%p1735_p6)
}
 0x3e6   :  { %s1739_s5 = scalar_lea.hbm %s2150_s10, 32 }
 0x3e7   :  { %p1740_p7 = scmp.ne.s32.totalorder %s2150_s10, %s1739_s5  ;;  %p1743_p8 = scmp.lt.u32.totalorder %s1739_s5, %s2150_s10 }
 0x3e9   :  { %p1745_p9 = pnand %p1743_p8, %p1740_p7 }
 0x3eb   :  { %1748 = shalt.err (!%p1745_p9)
}
 0x3ec   :  { %1256 = dma.vmem_to_hbm [thread:$0]  %s1254_s14, 32, %s2150_s10, [#allocation8]  }
 0x3ed   :  { %1751 = dma.done.wait [#allocation5], 32  }
 0x3ee   :  { %1752 = vsyncadd [#allocation5], 4294967264 }
 0x3ef   :  { %1753 = dma.done.wait [#allocation8], 32  }
 0x3f0   :  { %1754 = vsyncadd [#allocation8], 4294967264 }
 0x3f1   :  { %1263 = vsyncpa [#allocation4], 1 }
 0x3f2   :  { %1264 = vsyncpa [#allocation5], 1 }
 0x3f3   :  { %1265 = vsyncpa [#allocation8], 1 }

</bundles_post_ra>
